<compile_context>
chip_gen: v7x
topology: tpu7x:2x2x1
jax: 0.10.0
libtpu: 0.0.40
codegen_flags: <defaults>
</compile_context>

<pallas_src>
import numpy as np
import jax
import jax.numpy as jnp
from jax import lax
from jax.experimental import pallas as pl
from jax.experimental.pallas import tpu as pltpu

CHANNELS = 3
IMG_SIZE = 16
BATCH = 2
KSIZE, STRIDE, PAD = 3, 2, 1
BN_EPS = 0.8  # nn.BatchNorm2d(out_filters, 0.8) -> eps = 0.8


# ---------------------------------------------------------------------------
# Host-side, one-time weight folds (all in f32; bf16 cast happens at the end)
# ---------------------------------------------------------------------------
def _conv_to_dense(w_oihw, h, w, in_order):
    """Full Toeplitz fold of Conv2d(k=3,s=2,p=1) into a dense (F_in, F_out) matrix.

    in_order: 'hwc' -> row index y*W*Cin + x*Cin + c (channels-last activations)
    Column order is always (ho, wo, cout), i.e. channels-last.
    """
    cout, cin, _, _ = w_oihw.shape
    ho_n = (h - KSIZE + 2 * PAD) // STRIDE + 1
    wo_n = (w - KSIZE + 2 * PAD) // STRIDE + 1
    a = np.zeros((h * w * cin, ho_n * wo_n * cout), np.float32)
    oy, ox = np.meshgrid(np.arange(ho_n), np.arange(wo_n), indexing="ij")
    for kh in range(KSIZE):
        for kw in range(KSIZE):
            iy = STRIDE * oy - PAD + kh
            ix = STRIDE * ox - PAD + kw
            valid = (iy >= 0) & (iy < h) & (ix >= 0) & (ix < w)
            oy_v, ox_v = oy[valid], ox[valid]
            iy_v, ix_v = iy[valid], ix[valid]
            if in_order == "chw":
                rows = np.arange(cin)[None, :] * (h * w) + (iy_v * w + ix_v)[:, None]
            else:  # 'hwc'
                rows = (iy_v * w + ix_v)[:, None] * cin + np.arange(cin)[None, :]
            cols = (oy_v * wo_n + ox_v)[:, None] * cout + np.arange(cout)[None, :]
            a[rows[:, :, None], cols[:, None, :]] = w_oihw[:, :, kh, kw].T[None, :, :]
    return a, ho_n, wo_n


def _build_a0(w0):
    """Layer-0 folded weight for in-kernel im2col.

    Rows (c, kh, ix) index the 9 input image rows gathered per output row oy
    (vertical stride/padding handled by in-kernel slicing); the horizontal
    stride/padding is encoded in the matrix.  Cols are (ox, cout).
    """
    cout, cin = w0.shape[0], w0.shape[1]
    wo_n = (IMG_SIZE - KSIZE + 2 * PAD) // STRIDE + 1  # 8
    a = np.zeros((cin * KSIZE * IMG_SIZE, wo_n * cout), np.float32)
    for c in range(cin):
        for kh in range(KSIZE):
            for ox in range(wo_n):
                for kw in range(KSIZE):
                    ix = STRIDE * ox - PAD + kw
                    if 0 <= ix < IMG_SIZE:
                        a[c * KSIZE * IMG_SIZE + kh * IMG_SIZE + ix,
                          ox * cout:(ox + 1) * cout] += w0[:, c, kh, kw]
    return a  # (144, 128)


def _build_a1(w1, w_in):
    """Layer-1 folded weight: rows (kh, w, c) over the channels-last 128-wide
    (w, c) slabs of the layer-0 output; cols (ox, cout)."""
    cout, cin = w1.shape[0], w1.shape[1]
    wo_n = (w_in - KSIZE + 2 * PAD) // STRIDE + 1  # 4
    a = np.zeros((KSIZE * w_in * cin, wo_n * cout), np.float32)
    for kh in range(KSIZE):
        for wx in range(w_in):
            for c in range(cin):
                row = kh * w_in * cin + wx * cin + c
                for ox in range(wo_n):
                    for kw in range(KSIZE):
                        if wx == STRIDE * ox - PAD + kw:
                            a[row, ox * cout:(ox + 1) * cout] += w1[:, c, kh, kw]
    return a  # (384, 128)


# ---------------------------------------------------------------------------
# The fused Pallas kernel
# ---------------------------------------------------------------------------
def _disc_fused_kernel(x_ref, a0_ref, a1_ref, a2_ref, a3_ref, b_ref, o_ref):
    f32, bf16 = jnp.float32, jnp.bfloat16
    n = x_ref.shape[0]
    leaky = lambda t: jnp.maximum(t, 0.2 * t)  # LeakyReLU(0.2); Dropout2d = id at eval

    # ---- Block 0: Conv2d(3,16,k3,s2,p1) + bias + LeakyReLU (no BN) ----------
    # im2col LHS rows ordered (oy, n); each row is the concat of 9 static
    # (N, 16) image-row slices (zeros for the top padding).  Horizontal
    # stride/padding is encoded inside A0.
    zrow = jnp.zeros((n, IMG_SIZE), x_ref.dtype)
    row_cache = {}

    def in_row(c, iy):
        if iy < 0 or iy >= IMG_SIZE:
            return zrow
        if (c, iy) not in row_cache:
            row_cache[(c, iy)] = x_ref[:, c, iy, :]
        return row_cache[(c, iy)]

    lhs0 = jnp.concatenate(
        [jnp.concatenate([in_row(c, STRIDE * oy - PAD + kh)
                          for c in range(CHANNELS) for kh in range(KSIZE)], axis=-1)
         for oy in range(8)], axis=0).astype(bf16)                      # (8N, 144)
    y0 = jnp.dot(lhs0, a0_ref[...], preferred_element_type=f32)         # (8N, 128)
    y0 = leaky(y0 + b_ref[0:1, 0:128])                                  # f32

    # ---- Block 1: Conv2d(16,32) + bias + LeakyReLU (its BN folded forward) --
    # y0 row-pair h (rows h*n:(h+1)*n) IS the channels-last 128-wide (w, c)
    # slab of the 8x8x16 feature map, so the im2col LHS is 3 shifted slabs.
    zblk = jnp.zeros((n, 128), f32)
    slab = lambda h: zblk if h < 0 else y0[h * n:(h + 1) * n, :]
    lhs1 = jnp.concatenate(
        [jnp.concatenate([slab(STRIDE * oy - PAD + kh) for kh in range(KSIZE)], axis=-1)
         for oy in range(4)], axis=0).astype(bf16)                      # (4N, 384)
    y1 = jnp.dot(lhs1, a1_ref[...], preferred_element_type=f32)         # (4N, 128)
    y1 = leaky(y1 + b_ref[0:1, 128:256])                                # f32

    # ---- Blocks 2 & 3: dense folds (BN1 / BN2 pre-folded into rows & bias) --
    x2 = jnp.concatenate([y1[oy * n:(oy + 1) * n, :] for oy in range(4)],
                         axis=-1).astype(bf16)                          # (N, 512)
    y2 = jnp.dot(x2, a2_ref[...], preferred_element_type=f32)           # (N, 256)
    y2 = leaky(y2 + b_ref[0:1, 256:512]).astype(bf16)
    y3 = jnp.dot(y2, a3_ref[...], preferred_element_type=f32)           # (N, 128)
    y3 = leaky(y3 + b_ref[0:1, 512:640])                                # f32

    # ---- Head: Linear(128,1) + Sigmoid, BN3 folded into the weight row ------
    # VPU multiply + XLU lane reduction instead of a 1-column MXU matmul.
    logit = (jnp.sum(y3 * b_ref[0:1, 640:768], axis=-1, keepdims=True)
             + b_ref[0:1, 768:769])
    o_ref[...] = 1.0 / (1.0 + jnp.exp(-logit))


def discriminator_forward(img, params):
    """img: (N, CHANNELS, IMG_SIZE, IMG_SIZE) float32 NCHW (bf16 also accepted)."""
    n = img.shape[0]
    vmem = lambda: pl.BlockSpec(memory_space=pltpu.MemorySpace.VMEM)
    # No grid / tiling on purpose: total footprint is ~0.5 MiB, far under VMEM
    # on v5e/v6e/v7x, and a batch grid at N=2 would only replicate weight DMA.
    cost = pl.CostEstimate(flops=2_040_000, transcendentals=2,
                           bytes_accessed=475_000)
    return pl.pallas_call(
        _disc_fused_kernel,
        out_shape=jax.ShapeDtypeStruct((n, 1), jnp.float32),
        in_specs=[vmem() for _ in range(6)],
        out_specs=vmem(),
        cost_estimate=cost,
    )(img, params["a0"], params["a1"], params["a2"], params["a3"], params["bias"])


# ---------------------------------------------------------------------------
# Parameter setup (folds done on host in f32, then cast MXU operands to bf16)
# ---------------------------------------------------------------------------
def init_params(key):
    chans = [CHANNELS, 16, 32, 64, 128]
    keys = jax.random.split(key, 32)
    ki = 0
    blocks = []
    h = IMG_SIZE
    for i in range(4):
        cin, cout = chans[i], chans[i + 1]
        w = 0.05 * jax.random.normal(keys[ki], (cout, cin, KSIZE, KSIZE), jnp.float32); ki += 1
        w = w.astype(jnp.bfloat16).astype(jnp.float32)   # bf16-representable MXU operands
        b = 0.05 * jax.random.normal(keys[ki], (cout,), jnp.float32); ki += 1
        if i == 0:  # bn=False on the first block
            scale = jnp.ones((cout,), jnp.float32)
            shift = jnp.zeros((cout,), jnp.float32)
        else:       # eval-mode BatchNorm2d(cout, 0.8) as an affine y*scale + shift
            gamma = 1.0 + 0.1 * jax.random.normal(keys[ki], (cout,), jnp.float32); ki += 1
            beta = 0.1 * jax.random.normal(keys[ki], (cout,), jnp.float32); ki += 1
            rmean = 0.1 * jax.random.normal(keys[ki], (cout,), jnp.float32); ki += 1
            rvar = jax.random.uniform(keys[ki], (cout,), jnp.float32, 0.5, 1.5); ki += 1
            scale = gamma / jnp.sqrt(rvar + BN_EPS)
            shift = beta - rmean * scale
        ho = (h - KSIZE + 2 * PAD) // STRIDE + 1
        blocks.append(dict(w_oihw=w, b=b, scale=scale, shift=shift, h_in=h, h_out=ho))
        h = ho
    # ds_size after 4 strided convs on IMG_SIZE=16: 16 -> 8 -> 4 -> 2 -> 1
    feat = chans[-1] * h * h
    lin_w = 0.05 * jax.random.normal(keys[ki], (1, feat), jnp.float32); ki += 1
    lin_w = lin_w.astype(jnp.bfloat16).astype(jnp.float32)
    lin_b = 0.05 * jax.random.normal(keys[ki], (1,), jnp.float32); ki += 1

    w_np = [np.asarray(blk["w_oihw"]) for blk in blocks]
    b_np = [np.asarray(blk["b"]) for blk in blocks]
    sc_np = [np.asarray(blk["scale"]) for blk in blocks]
    sh_np = [np.asarray(blk["shift"]) for blk in blocks]

    a0 = _build_a0(w_np[0])                              # (144, 128)
    a1 = _build_a1(w_np[1], blocks[1]["h_in"])           # (384, 128)
    a2, _, _ = _conv_to_dense(w_np[2], 4, 4, "hwc")      # (512, 256)
    a3, _, _ = _conv_to_dense(w_np[3], 2, 2, "hwc")      # (256, 128)

    # Fold eval-mode BN of block i into the NEXT matmul (rows scaled by the
    # per-position scale, shift pushed into the next layer's bias), in f32.
    s1 = np.tile(sc_np[1], 16); shf1 = np.tile(sh_np[1], 16)   # over 4x4x32 (c fastest)
    s2 = np.tile(sc_np[2], 4);  shf2 = np.tile(sh_np[2], 4)    # over 2x2x64
    s3 = sc_np[3];              shf3 = sh_np[3]                # over 1x1x128

    b2_eff = np.tile(b_np[2], 4) + shf1 @ a2                   # (256,)
    b3_eff = b_np[3] + shf2 @ a3                               # (128,)
    a2_f = s1[:, None] * a2
    a3_f = s2[:, None] * a3
    lin_row = np.asarray(lin_w)[0]                             # (128,)
    head_row = s3 * lin_row
    head_bias = float(np.asarray(lin_b)[0] + shf3 @ lin_row)

    # One packed f32 table: [b0(128) | b1(128) | b2_eff(256) | b3_eff(128) |
    #                        head_row(128) | head_bias(1) | pad]
    bias_tab = np.zeros((1, 1024), np.float32)
    bias_tab[0, 0:128] = np.tile(b_np[0], 8)     # conv0 bias tiled over (ox, cout)
    bias_tab[0, 128:256] = np.tile(b_np[1], 4)   # conv1 bias tiled over (ox, cout)
    bias_tab[0, 256:512] = b2_eff
    bias_tab[0, 512:640] = b3_eff
    bias_tab[0, 640:768] = head_row
    bias_tab[0, 768] = head_bias

    return dict(
        # reference-side params
        blocks=blocks, lin_w=lin_w, lin_b=lin_b,
        # fused-kernel params
        a0=jnp.asarray(a0, jnp.bfloat16),
        a1=jnp.asarray(a1, jnp.bfloat16),
        a2=jnp.asarray(a2_f, jnp.bfloat16),
        a3=jnp.asarray(a3_f, jnp.bfloat16),
        bias=jnp.asarray(bias_tab, jnp.float32),
    )


# ---------------------------------------------------------------------------
# Pure-JAX reference with the same bf16-operand / f32-accumulate policy.
# ---------------------------------------------------------------------------
def reference_forward(img, params):
    q = lambda t: t.astype(jnp.bfloat16).astype(jnp.float32)
    x = img
    for blk in params["blocks"]:
        y = lax.conv_general_dilated(
            q(x), blk["w_oihw"], window_strides=(STRIDE, STRIDE),
            padding=((PAD, PAD), (PAD, PAD)),
            dimension_numbers=("NCHW", "OIHW", "NCHW"),
            precision=lax.Precision.HIGHEST)
        y = y + blk["b"].reshape(1, -1, 1, 1)
        y = jnp.where(y > 0.0, y, 0.2 * y)
        y = y * blk["scale"].reshape(1, -1, 1, 1) + blk["shift"].reshape(1, -1, 1, 1)
        x = y
    flat = q(x.reshape(x.shape[0], -1))
    logit = jnp.dot(flat, params["lin_w"].T,
                    precision=lax.Precision.HIGHEST) + params["lin_b"]
    return jax.nn.sigmoid(logit)


if __name__ == "__main__":
    key = jax.random.PRNGKey(0)
    pkey, xkey = jax.random.split(key)
    params = init_params(pkey)
    img = jax.random.normal(xkey, (BATCH, CHANNELS, IMG_SIZE, IMG_SIZE), jnp.float32)

    validity = jax.block_until_ready(discriminator_forward(img, params))
    ref = jax.block_until_ready(reference_forward(img, params))

    assert validity.shape == (BATCH, 1), validity.shape
    assert bool(jnp.all(jnp.isfinite(validity)))
    assert bool(jnp.allclose(validity, ref, atol=3e-3, rtol=2e-2)), (validity, ref)
    print("KERNEL_OK")
</pallas_src>

<mosaic_0001>
module attributes {stable_mosaic.version = 11 : i64} {
  func.func @_disc_fused_kernel(%arg0: memref<2x3x16x16xf32, #tpu.memory_space<vmem>>, %arg1: memref<144x128xbf16, #tpu.memory_space<vmem>>, %arg2: memref<384x128xbf16, #tpu.memory_space<vmem>>, %arg3: memref<512x256xbf16, #tpu.memory_space<vmem>>, %arg4: memref<256x128xbf16, #tpu.memory_space<vmem>>, %arg5: memref<1x1024xf32, #tpu.memory_space<vmem>>, %arg6: memref<2x1xf32, #tpu.memory_space<vmem>>) attributes {dimension_semantics = [], scalar_prefetch = 0 : i64, scratch_operands = 0 : i64, tpu.core_type = #tpu.core_type<tc>} {
    %cst = arith.constant 0.000000e+00 : f32
    %0 = vector.broadcast %cst : f32 to vector<2x16xf32>
    %c0 = arith.constant 0 : index
    %c0_0 = arith.constant 0 : index
    %c0_1 = arith.constant 0 : index
    %c0_2 = arith.constant 0 : index
    %1 = vector.load %arg0[%c0, %c0_0, %c0_1, %c0_2] : memref<2x3x16x16xf32, #tpu.memory_space<vmem>>, vector<2x1x1x16xf32>
    %2 = vector.shape_cast %1 : vector<2x1x1x16xf32> to vector<2x16xf32>
    %c0_3 = arith.constant 0 : index
    %c0_4 = arith.constant 0 : index
    %c1 = arith.constant 1 : index
    %c0_5 = arith.constant 0 : index
    %3 = vector.load %arg0[%c0_3, %c0_4, %c1, %c0_5] : memref<2x3x16x16xf32, #tpu.memory_space<vmem>>, vector<2x1x1x16xf32>
    %4 = vector.shape_cast %3 : vector<2x1x1x16xf32> to vector<2x16xf32>
    %c0_6 = arith.constant 0 : index
    %c1_7 = arith.constant 1 : index
    %c0_8 = arith.constant 0 : index
    %c0_9 = arith.constant 0 : index
    %5 = vector.load %arg0[%c0_6, %c1_7, %c0_8, %c0_9] : memref<2x3x16x16xf32, #tpu.memory_space<vmem>>, vector<2x1x1x16xf32>
    %6 = vector.shape_cast %5 : vector<2x1x1x16xf32> to vector<2x16xf32>
    %c0_10 = arith.constant 0 : index
    %c1_11 = arith.constant 1 : index
    %c1_12 = arith.constant 1 : index
    %c0_13 = arith.constant 0 : index
    %7 = vector.load %arg0[%c0_10, %c1_11, %c1_12, %c0_13] : memref<2x3x16x16xf32, #tpu.memory_space<vmem>>, vector<2x1x1x16xf32>
    %8 = vector.shape_cast %7 : vector<2x1x1x16xf32> to vector<2x16xf32>
    %c0_14 = arith.constant 0 : index
    %c2 = arith.constant 2 : index
    %c0_15 = arith.constant 0 : index
    %c0_16 = arith.constant 0 : index
    %9 = vector.load %arg0[%c0_14, %c2, %c0_15, %c0_16] : memref<2x3x16x16xf32, #tpu.memory_space<vmem>>, vector<2x1x1x16xf32>
    %10 = vector.shape_cast %9 : vector<2x1x1x16xf32> to vector<2x16xf32>
    %c0_17 = arith.constant 0 : index
    %c2_18 = arith.constant 2 : index
    %c1_19 = arith.constant 1 : index
    %c0_20 = arith.constant 0 : index
    %11 = vector.load %arg0[%c0_17, %c2_18, %c1_19, %c0_20] : memref<2x3x16x16xf32, #tpu.memory_space<vmem>>, vector<2x1x1x16xf32>
    %12 = vector.shape_cast %11 : vector<2x1x1x16xf32> to vector<2x16xf32>
    %13 = tpu.concatenate %0, %2, %4, %0, %6, %8, %0, %10, %12 in 1 : vector<2x16xf32>, vector<2x16xf32>, vector<2x16xf32>, vector<2x16xf32>, vector<2x16xf32>, vector<2x16xf32>, vector<2x16xf32>, vector<2x16xf32>, vector<2x16xf32> -> vector<2x144xf32>
    %c0_21 = arith.constant 0 : index
    %c0_22 = arith.constant 0 : index
    %c2_23 = arith.constant 2 : index
    %c0_24 = arith.constant 0 : index
    %14 = vector.load %arg0[%c0_21, %c0_22, %c2_23, %c0_24] : memref<2x3x16x16xf32, #tpu.memory_space<vmem>>, vector<2x1x1x16xf32>
    %15 = vector.shape_cast %14 : vector<2x1x1x16xf32> to vector<2x16xf32>
    %c0_25 = arith.constant 0 : index
    %c0_26 = arith.constant 0 : index
    %c3 = arith.constant 3 : index
    %c0_27 = arith.constant 0 : index
    %16 = vector.load %arg0[%c0_25, %c0_26, %c3, %c0_27] : memref<2x3x16x16xf32, #tpu.memory_space<vmem>>, vector<2x1x1x16xf32>
    %17 = vector.shape_cast %16 : vector<2x1x1x16xf32> to vector<2x16xf32>
    %c0_28 = arith.constant 0 : index
    %c1_29 = arith.constant 1 : index
    %c2_30 = arith.constant 2 : index
    %c0_31 = arith.constant 0 : index
    %18 = vector.load %arg0[%c0_28, %c1_29, %c2_30, %c0_31] : memref<2x3x16x16xf32, #tpu.memory_space<vmem>>, vector<2x1x1x16xf32>
    %19 = vector.shape_cast %18 : vector<2x1x1x16xf32> to vector<2x16xf32>
    %c0_32 = arith.constant 0 : index
    %c1_33 = arith.constant 1 : index
    %c3_34 = arith.constant 3 : index
    %c0_35 = arith.constant 0 : index
    %20 = vector.load %arg0[%c0_32, %c1_33, %c3_34, %c0_35] : memref<2x3x16x16xf32, #tpu.memory_space<vmem>>, vector<2x1x1x16xf32>
    %21 = vector.shape_cast %20 : vector<2x1x1x16xf32> to vector<2x16xf32>
    %c0_36 = arith.constant 0 : index
    %c2_37 = arith.constant 2 : index
    %c2_38 = arith.constant 2 : index
    %c0_39 = arith.constant 0 : index
    %22 = vector.load %arg0[%c0_36, %c2_37, %c2_38, %c0_39] : memref<2x3x16x16xf32, #tpu.memory_space<vmem>>, vector<2x1x1x16xf32>
    %23 = vector.shape_cast %22 : vector<2x1x1x16xf32> to vector<2x16xf32>
    %c0_40 = arith.constant 0 : index
    %c2_41 = arith.constant 2 : index
    %c3_42 = arith.constant 3 : index
    %c0_43 = arith.constant 0 : index
    %24 = vector.load %arg0[%c0_40, %c2_41, %c3_42, %c0_43] : memref<2x3x16x16xf32, #tpu.memory_space<vmem>>, vector<2x1x1x16xf32>
    %25 = vector.shape_cast %24 : vector<2x1x1x16xf32> to vector<2x16xf32>
    %26 = tpu.concatenate %4, %15, %17, %8, %19, %21, %12, %23, %25 in 1 : vector<2x16xf32>, vector<2x16xf32>, vector<2x16xf32>, vector<2x16xf32>, vector<2x16xf32>, vector<2x16xf32>, vector<2x16xf32>, vector<2x16xf32>, vector<2x16xf32> -> vector<2x144xf32>
    %c0_44 = arith.constant 0 : index
    %c0_45 = arith.constant 0 : index
    %c4 = arith.constant 4 : index
    %c0_46 = arith.constant 0 : index
    %27 = vector.load %arg0[%c0_44, %c0_45, %c4, %c0_46] : memref<2x3x16x16xf32, #tpu.memory_space<vmem>>, vector<2x1x1x16xf32>
    %28 = vector.shape_cast %27 : vector<2x1x1x16xf32> to vector<2x16xf32>
    %c0_47 = arith.constant 0 : index
    %c0_48 = arith.constant 0 : index
    %c5 = arith.constant 5 : index
    %c0_49 = arith.constant 0 : index
    %29 = vector.load %arg0[%c0_47, %c0_48, %c5, %c0_49] : memref<2x3x16x16xf32, #tpu.memory_space<vmem>>, vector<2x1x1x16xf32>
    %30 = vector.shape_cast %29 : vector<2x1x1x16xf32> to vector<2x16xf32>
    %c0_50 = arith.constant 0 : index
    %c1_51 = arith.constant 1 : index
    %c4_52 = arith.constant 4 : index
    %c0_53 = arith.constant 0 : index
    %31 = vector.load %arg0[%c0_50, %c1_51, %c4_52, %c0_53] : memref<2x3x16x16xf32, #tpu.memory_space<vmem>>, vector<2x1x1x16xf32>
    %32 = vector.shape_cast %31 : vector<2x1x1x16xf32> to vector<2x16xf32>
    %c0_54 = arith.constant 0 : index
    %c1_55 = arith.constant 1 : index
    %c5_56 = arith.constant 5 : index
    %c0_57 = arith.constant 0 : index
    %33 = vector.load %arg0[%c0_54, %c1_55, %c5_56, %c0_57] : memref<2x3x16x16xf32, #tpu.memory_space<vmem>>, vector<2x1x1x16xf32>
    %34 = vector.shape_cast %33 : vector<2x1x1x16xf32> to vector<2x16xf32>
    %c0_58 = arith.constant 0 : index
    %c2_59 = arith.constant 2 : index
    %c4_60 = arith.constant 4 : index
    %c0_61 = arith.constant 0 : index
    %35 = vector.load %arg0[%c0_58, %c2_59, %c4_60, %c0_61] : memref<2x3x16x16xf32, #tpu.memory_space<vmem>>, vector<2x1x1x16xf32>
    %36 = vector.shape_cast %35 : vector<2x1x1x16xf32> to vector<2x16xf32>
    %c0_62 = arith.constant 0 : index
    %c2_63 = arith.constant 2 : index
    %c5_64 = arith.constant 5 : index
    %c0_65 = arith.constant 0 : index
    %37 = vector.load %arg0[%c0_62, %c2_63, %c5_64, %c0_65] : memref<2x3x16x16xf32, #tpu.memory_space<vmem>>, vector<2x1x1x16xf32>
    %38 = vector.shape_cast %37 : vector<2x1x1x16xf32> to vector<2x16xf32>
    %39 = tpu.concatenate %17, %28, %30, %21, %32, %34, %25, %36, %38 in 1 : vector<2x16xf32>, vector<2x16xf32>, vector<2x16xf32>, vector<2x16xf32>, vector<2x16xf32>, vector<2x16xf32>, vector<2x16xf32>, vector<2x16xf32>, vector<2x16xf32> -> vector<2x144xf32>
    %c0_66 = arith.constant 0 : index
    %c0_67 = arith.constant 0 : index
    %c6 = arith.constant 6 : index
    %c0_68 = arith.constant 0 : index
    %40 = vector.load %arg0[%c0_66, %c0_67, %c6, %c0_68] : memref<2x3x16x16xf32, #tpu.memory_space<vmem>>, vector<2x1x1x16xf32>
    %41 = vector.shape_cast %40 : vector<2x1x1x16xf32> to vector<2x16xf32>
    %c0_69 = arith.constant 0 : index
    %c0_70 = arith.constant 0 : index
    %c7 = arith.constant 7 : index
    %c0_71 = arith.constant 0 : index
    %42 = vector.load %arg0[%c0_69, %c0_70, %c7, %c0_71] : memref<2x3x16x16xf32, #tpu.memory_space<vmem>>, vector<2x1x1x16xf32>
    %43 = vector.shape_cast %42 : vector<2x1x1x16xf32> to vector<2x16xf32>
    %c0_72 = arith.constant 0 : index
    %c1_73 = arith.constant 1 : index
    %c6_74 = arith.constant 6 : index
    %c0_75 = arith.constant 0 : index
    %44 = vector.load %arg0[%c0_72, %c1_73, %c6_74, %c0_75] : memref<2x3x16x16xf32, #tpu.memory_space<vmem>>, vector<2x1x1x16xf32>
    %45 = vector.shape_cast %44 : vector<2x1x1x16xf32> to vector<2x16xf32>
    %c0_76 = arith.constant 0 : index
    %c1_77 = arith.constant 1 : index
    %c7_78 = arith.constant 7 : index
    %c0_79 = arith.constant 0 : index
    %46 = vector.load %arg0[%c0_76, %c1_77, %c7_78, %c0_79] : memref<2x3x16x16xf32, #tpu.memory_space<vmem>>, vector<2x1x1x16xf32>
    %47 = vector.shape_cast %46 : vector<2x1x1x16xf32> to vector<2x16xf32>
    %c0_80 = arith.constant 0 : index
    %c2_81 = arith.constant 2 : index
    %c6_82 = arith.constant 6 : index
    %c0_83 = arith.constant 0 : index
    %48 = vector.load %arg0[%c0_80, %c2_81, %c6_82, %c0_83] : memref<2x3x16x16xf32, #tpu.memory_space<vmem>>, vector<2x1x1x16xf32>
    %49 = vector.shape_cast %48 : vector<2x1x1x16xf32> to vector<2x16xf32>
    %c0_84 = arith.constant 0 : index
    %c2_85 = arith.constant 2 : index
    %c7_86 = arith.constant 7 : index
    %c0_87 = arith.constant 0 : index
    %50 = vector.load %arg0[%c0_84, %c2_85, %c7_86, %c0_87] : memref<2x3x16x16xf32, #tpu.memory_space<vmem>>, vector<2x1x1x16xf32>
    %51 = vector.shape_cast %50 : vector<2x1x1x16xf32> to vector<2x16xf32>
    %52 = tpu.concatenate %30, %41, %43, %34, %45, %47, %38, %49, %51 in 1 : vector<2x16xf32>, vector<2x16xf32>, vector<2x16xf32>, vector<2x16xf32>, vector<2x16xf32>, vector<2x16xf32>, vector<2x16xf32>, vector<2x16xf32>, vector<2x16xf32> -> vector<2x144xf32>
    %c0_88 = arith.constant 0 : index
    %c0_89 = arith.constant 0 : index
    %c8 = arith.constant 8 : index
    %c0_90 = arith.constant 0 : index
    %53 = vector.load %arg0[%c0_88, %c0_89, %c8, %c0_90] : memref<2x3x16x16xf32, #tpu.memory_space<vmem>>, vector<2x1x1x16xf32>
    %54 = vector.shape_cast %53 : vector<2x1x1x16xf32> to vector<2x16xf32>
    %c0_91 = arith.constant 0 : index
    %c0_92 = arith.constant 0 : index
    %c9 = arith.constant 9 : index
    %c0_93 = arith.constant 0 : index
    %55 = vector.load %arg0[%c0_91, %c0_92, %c9, %c0_93] : memref<2x3x16x16xf32, #tpu.memory_space<vmem>>, vector<2x1x1x16xf32>
    %56 = vector.shape_cast %55 : vector<2x1x1x16xf32> to vector<2x16xf32>
    %c0_94 = arith.constant 0 : index
    %c1_95 = arith.constant 1 : index
    %c8_96 = arith.constant 8 : index
    %c0_97 = arith.constant 0 : index
    %57 = vector.load %arg0[%c0_94, %c1_95, %c8_96, %c0_97] : memref<2x3x16x16xf32, #tpu.memory_space<vmem>>, vector<2x1x1x16xf32>
    %58 = vector.shape_cast %57 : vector<2x1x1x16xf32> to vector<2x16xf32>
    %c0_98 = arith.constant 0 : index
    %c1_99 = arith.constant 1 : index
    %c9_100 = arith.constant 9 : index
    %c0_101 = arith.constant 0 : index
    %59 = vector.load %arg0[%c0_98, %c1_99, %c9_100, %c0_101] : memref<2x3x16x16xf32, #tpu.memory_space<vmem>>, vector<2x1x1x16xf32>
    %60 = vector.shape_cast %59 : vector<2x1x1x16xf32> to vector<2x16xf32>
    %c0_102 = arith.constant 0 : index
    %c2_103 = arith.constant 2 : index
    %c8_104 = arith.constant 8 : index
    %c0_105 = arith.constant 0 : index
    %61 = vector.load %arg0[%c0_102, %c2_103, %c8_104, %c0_105] : memref<2x3x16x16xf32, #tpu.memory_space<vmem>>, vector<2x1x1x16xf32>
    %62 = vector.shape_cast %61 : vector<2x1x1x16xf32> to vector<2x16xf32>
    %c0_106 = arith.constant 0 : index
    %c2_107 = arith.constant 2 : index
    %c9_108 = arith.constant 9 : index
    %c0_109 = arith.constant 0 : index
    %63 = vector.load %arg0[%c0_106, %c2_107, %c9_108, %c0_109] : memref<2x3x16x16xf32, #tpu.memory_space<vmem>>, vector<2x1x1x16xf32>
    %64 = vector.shape_cast %63 : vector<2x1x1x16xf32> to vector<2x16xf32>
    %65 = tpu.concatenate %43, %54, %56, %47, %58, %60, %51, %62, %64 in 1 : vector<2x16xf32>, vector<2x16xf32>, vector<2x16xf32>, vector<2x16xf32>, vector<2x16xf32>, vector<2x16xf32>, vector<2x16xf32>, vector<2x16xf32>, vector<2x16xf32> -> vector<2x144xf32>
    %c0_110 = arith.constant 0 : index
    %c0_111 = arith.constant 0 : index
    %c10 = arith.constant 10 : index
    %c0_112 = arith.constant 0 : index
    %66 = vector.load %arg0[%c0_110, %c0_111, %c10, %c0_112] : memref<2x3x16x16xf32, #tpu.memory_space<vmem>>, vector<2x1x1x16xf32>
    %67 = vector.shape_cast %66 : vector<2x1x1x16xf32> to vector<2x16xf32>
    %c0_113 = arith.constant 0 : index
    %c0_114 = arith.constant 0 : index
    %c11 = arith.constant 11 : index
    %c0_115 = arith.constant 0 : index
    %68 = vector.load %arg0[%c0_113, %c0_114, %c11, %c0_115] : memref<2x3x16x16xf32, #tpu.memory_space<vmem>>, vector<2x1x1x16xf32>
    %69 = vector.shape_cast %68 : vector<2x1x1x16xf32> to vector<2x16xf32>
    %c0_116 = arith.constant 0 : index
    %c1_117 = arith.constant 1 : index
    %c10_118 = arith.constant 10 : index
    %c0_119 = arith.constant 0 : index
    %70 = vector.load %arg0[%c0_116, %c1_117, %c10_118, %c0_119] : memref<2x3x16x16xf32, #tpu.memory_space<vmem>>, vector<2x1x1x16xf32>
    %71 = vector.shape_cast %70 : vector<2x1x1x16xf32> to vector<2x16xf32>
    %c0_120 = arith.constant 0 : index
    %c1_121 = arith.constant 1 : index
    %c11_122 = arith.constant 11 : index
    %c0_123 = arith.constant 0 : index
    %72 = vector.load %arg0[%c0_120, %c1_121, %c11_122, %c0_123] : memref<2x3x16x16xf32, #tpu.memory_space<vmem>>, vector<2x1x1x16xf32>
    %73 = vector.shape_cast %72 : vector<2x1x1x16xf32> to vector<2x16xf32>
    %c0_124 = arith.constant 0 : index
    %c2_125 = arith.constant 2 : index
    %c10_126 = arith.constant 10 : index
    %c0_127 = arith.constant 0 : index
    %74 = vector.load %arg0[%c0_124, %c2_125, %c10_126, %c0_127] : memref<2x3x16x16xf32, #tpu.memory_space<vmem>>, vector<2x1x1x16xf32>
    %75 = vector.shape_cast %74 : vector<2x1x1x16xf32> to vector<2x16xf32>
    %c0_128 = arith.constant 0 : index
    %c2_129 = arith.constant 2 : index
    %c11_130 = arith.constant 11 : index
    %c0_131 = arith.constant 0 : index
    %76 = vector.load %arg0[%c0_128, %c2_129, %c11_130, %c0_131] : memref<2x3x16x16xf32, #tpu.memory_space<vmem>>, vector<2x1x1x16xf32>
    %77 = vector.shape_cast %76 : vector<2x1x1x16xf32> to vector<2x16xf32>
    %78 = tpu.concatenate %56, %67, %69, %60, %71, %73, %64, %75, %77 in 1 : vector<2x16xf32>, vector<2x16xf32>, vector<2x16xf32>, vector<2x16xf32>, vector<2x16xf32>, vector<2x16xf32>, vector<2x16xf32>, vector<2x16xf32>, vector<2x16xf32> -> vector<2x144xf32>
    %c0_132 = arith.constant 0 : index
    %c0_133 = arith.constant 0 : index
    %c12 = arith.constant 12 : index
    %c0_134 = arith.constant 0 : index
    %79 = vector.load %arg0[%c0_132, %c0_133, %c12, %c0_134] : memref<2x3x16x16xf32, #tpu.memory_space<vmem>>, vector<2x1x1x16xf32>
    %80 = vector.shape_cast %79 : vector<2x1x1x16xf32> to vector<2x16xf32>
    %c0_135 = arith.constant 0 : index
    %c0_136 = arith.constant 0 : index
    %c13 = arith.constant 13 : index
    %c0_137 = arith.constant 0 : index
    %81 = vector.load %arg0[%c0_135, %c0_136, %c13, %c0_137] : memref<2x3x16x16xf32, #tpu.memory_space<vmem>>, vector<2x1x1x16xf32>
    %82 = vector.shape_cast %81 : vector<2x1x1x16xf32> to vector<2x16xf32>
    %c0_138 = arith.constant 0 : index
    %c1_139 = arith.constant 1 : index
    %c12_140 = arith.constant 12 : index
    %c0_141 = arith.constant 0 : index
    %83 = vector.load %arg0[%c0_138, %c1_139, %c12_140, %c0_141] : memref<2x3x16x16xf32, #tpu.memory_space<vmem>>, vector<2x1x1x16xf32>
    %84 = vector.shape_cast %83 : vector<2x1x1x16xf32> to vector<2x16xf32>
    %c0_142 = arith.constant 0 : index
    %c1_143 = arith.constant 1 : index
    %c13_144 = arith.constant 13 : index
    %c0_145 = arith.constant 0 : index
    %85 = vector.load %arg0[%c0_142, %c1_143, %c13_144, %c0_145] : memref<2x3x16x16xf32, #tpu.memory_space<vmem>>, vector<2x1x1x16xf32>
    %86 = vector.shape_cast %85 : vector<2x1x1x16xf32> to vector<2x16xf32>
    %c0_146 = arith.constant 0 : index
    %c2_147 = arith.constant 2 : index
    %c12_148 = arith.constant 12 : index
    %c0_149 = arith.constant 0 : index
    %87 = vector.load %arg0[%c0_146, %c2_147, %c12_148, %c0_149] : memref<2x3x16x16xf32, #tpu.memory_space<vmem>>, vector<2x1x1x16xf32>
    %88 = vector.shape_cast %87 : vector<2x1x1x16xf32> to vector<2x16xf32>
    %c0_150 = arith.constant 0 : index
    %c2_151 = arith.constant 2 : index
    %c13_152 = arith.constant 13 : index
    %c0_153 = arith.constant 0 : index
    %89 = vector.load %arg0[%c0_150, %c2_151, %c13_152, %c0_153] : memref<2x3x16x16xf32, #tpu.memory_space<vmem>>, vector<2x1x1x16xf32>
    %90 = vector.shape_cast %89 : vector<2x1x1x16xf32> to vector<2x16xf32>
    %91 = tpu.concatenate %69, %80, %82, %73, %84, %86, %77, %88, %90 in 1 : vector<2x16xf32>, vector<2x16xf32>, vector<2x16xf32>, vector<2x16xf32>, vector<2x16xf32>, vector<2x16xf32>, vector<2x16xf32>, vector<2x16xf32>, vector<2x16xf32> -> vector<2x144xf32>
    %c0_154 = arith.constant 0 : index
    %c0_155 = arith.constant 0 : index
    %c14 = arith.constant 14 : index
    %c0_156 = arith.constant 0 : index
    %92 = vector.load %arg0[%c0_154, %c0_155, %c14, %c0_156] : memref<2x3x16x16xf32, #tpu.memory_space<vmem>>, vector<2x1x1x16xf32>
    %93 = vector.shape_cast %92 : vector<2x1x1x16xf32> to vector<2x16xf32>
    %c0_157 = arith.constant 0 : index
    %c0_158 = arith.constant 0 : index
    %c15 = arith.constant 15 : index
    %c0_159 = arith.constant 0 : index
    %94 = vector.load %arg0[%c0_157, %c0_158, %c15, %c0_159] : memref<2x3x16x16xf32, #tpu.memory_space<vmem>>, vector<2x1x1x16xf32>
    %95 = vector.shape_cast %94 : vector<2x1x1x16xf32> to vector<2x16xf32>
    %c0_160 = arith.constant 0 : index
    %c1_161 = arith.constant 1 : index
    %c14_162 = arith.constant 14 : index
    %c0_163 = arith.constant 0 : index
    %96 = vector.load %arg0[%c0_160, %c1_161, %c14_162, %c0_163] : memref<2x3x16x16xf32, #tpu.memory_space<vmem>>, vector<2x1x1x16xf32>
    %97 = vector.shape_cast %96 : vector<2x1x1x16xf32> to vector<2x16xf32>
    %c0_164 = arith.constant 0 : index
    %c1_165 = arith.constant 1 : index
    %c15_166 = arith.constant 15 : index
    %c0_167 = arith.constant 0 : index
    %98 = vector.load %arg0[%c0_164, %c1_165, %c15_166, %c0_167] : memref<2x3x16x16xf32, #tpu.memory_space<vmem>>, vector<2x1x1x16xf32>
    %99 = vector.shape_cast %98 : vector<2x1x1x16xf32> to vector<2x16xf32>
    %c0_168 = arith.constant 0 : index
    %c2_169 = arith.constant 2 : index
    %c14_170 = arith.constant 14 : index
    %c0_171 = arith.constant 0 : index
    %100 = vector.load %arg0[%c0_168, %c2_169, %c14_170, %c0_171] : memref<2x3x16x16xf32, #tpu.memory_space<vmem>>, vector<2x1x1x16xf32>
    %101 = vector.shape_cast %100 : vector<2x1x1x16xf32> to vector<2x16xf32>
    %c0_172 = arith.constant 0 : index
    %c2_173 = arith.constant 2 : index
    %c15_174 = arith.constant 15 : index
    %c0_175 = arith.constant 0 : index
    %102 = vector.load %arg0[%c0_172, %c2_173, %c15_174, %c0_175] : memref<2x3x16x16xf32, #tpu.memory_space<vmem>>, vector<2x1x1x16xf32>
    %103 = vector.shape_cast %102 : vector<2x1x1x16xf32> to vector<2x16xf32>
    %104 = tpu.concatenate %82, %93, %95, %86, %97, %99, %90, %101, %103 in 1 : vector<2x16xf32>, vector<2x16xf32>, vector<2x16xf32>, vector<2x16xf32>, vector<2x16xf32>, vector<2x16xf32>, vector<2x16xf32>, vector<2x16xf32>, vector<2x16xf32> -> vector<2x144xf32>
    %105 = tpu.concatenate %13, %26, %39, %52, %65, %78, %91, %104 in 0 : vector<2x144xf32>, vector<2x144xf32>, vector<2x144xf32>, vector<2x144xf32>, vector<2x144xf32>, vector<2x144xf32>, vector<2x144xf32>, vector<2x144xf32> -> vector<16x144xf32>
    %106 = arith.truncf %105 : vector<16x144xf32> to vector<16x144xbf16>
    %c0_176 = arith.constant 0 : index
    %c0_177 = arith.constant 0 : index
    %107 = vector.load %arg1[%c0_176, %c0_177] : memref<144x128xbf16, #tpu.memory_space<vmem>>, vector<144x128xbf16>
    %cst_178 = arith.constant dense<0.000000e+00> : vector<16x128xf32>
    %108 = tpu.matmul %106, %107, %cst_178 {dimension_numbers = #tpu.dot_dimension_numbers<[1], [0], [0], [1], [0, 0, 1, 1], [], []>} : vector<16x144xbf16>, vector<144x128xbf16>, vector<16x128xf32> -> vector<16x128xf32>
    %c0_179 = arith.constant 0 : index
    %c0_180 = arith.constant 0 : index
    %109 = vector.load %arg5[%c0_179, %c0_180] : memref<1x1024xf32, #tpu.memory_space<vmem>>, vector<1x128xf32>
    %110 = vector.broadcast %109 : vector<1x128xf32> to vector<16x128xf32>
    %111 = arith.addf %108, %110 : vector<16x128xf32>
    %cst_181 = arith.constant 2.000000e-01 : f32
    %112 = vector.broadcast %cst_181 : f32 to vector<16x128xf32>
    %113 = arith.mulf %112, %111 : vector<16x128xf32>
    %114 = arith.maximumf %111, %113 : vector<16x128xf32>
    %cst_182 = arith.constant 0.000000e+00 : f32
    %115 = vector.broadcast %cst_182 : f32 to vector<2x128xf32>
    %116 = vector.extract_strided_slice %114 {offsets = [0, 0], sizes = [2, 128], strides = [1, 1]} : vector<16x128xf32> to vector<2x128xf32>
    %117 = vector.extract_strided_slice %114 {offsets = [2, 0], sizes = [2, 128], strides = [1, 1]} : vector<16x128xf32> to vector<2x128xf32>
    %118 = tpu.concatenate %115, %116, %117 in 1 : vector<2x128xf32>, vector<2x128xf32>, vector<2x128xf32> -> vector<2x384xf32>
    %119 = vector.extract_strided_slice %114 {offsets = [2, 0], sizes = [2, 128], strides = [1, 1]} : vector<16x128xf32> to vector<2x128xf32>
    %120 = vector.extract_strided_slice %114 {offsets = [4, 0], sizes = [2, 128], strides = [1, 1]} : vector<16x128xf32> to vector<2x128xf32>
    %121 = vector.extract_strided_slice %114 {offsets = [6, 0], sizes = [2, 128], strides = [1, 1]} : vector<16x128xf32> to vector<2x128xf32>
    %122 = tpu.concatenate %119, %120, %121 in 1 : vector<2x128xf32>, vector<2x128xf32>, vector<2x128xf32> -> vector<2x384xf32>
    %123 = vector.extract_strided_slice %114 {offsets = [6, 0], sizes = [2, 128], strides = [1, 1]} : vector<16x128xf32> to vector<2x128xf32>
    %124 = vector.extract_strided_slice %114 {offsets = [8, 0], sizes = [2, 128], strides = [1, 1]} : vector<16x128xf32> to vector<2x128xf32>
    %125 = vector.extract_strided_slice %114 {offsets = [10, 0], sizes = [2, 128], strides = [1, 1]} : vector<16x128xf32> to vector<2x128xf32>
    %126 = tpu.concatenate %123, %124, %125 in 1 : vector<2x128xf32>, vector<2x128xf32>, vector<2x128xf32> -> vector<2x384xf32>
    %127 = vector.extract_strided_slice %114 {offsets = [10, 0], sizes = [2, 128], strides = [1, 1]} : vector<16x128xf32> to vector<2x128xf32>
    %128 = vector.extract_strided_slice %114 {offsets = [12, 0], sizes = [2, 128], strides = [1, 1]} : vector<16x128xf32> to vector<2x128xf32>
    %129 = vector.extract_strided_slice %114 {offsets = [14, 0], sizes = [2, 128], strides = [1, 1]} : vector<16x128xf32> to vector<2x128xf32>
    %130 = tpu.concatenate %127, %128, %129 in 1 : vector<2x128xf32>, vector<2x128xf32>, vector<2x128xf32> -> vector<2x384xf32>
    %131 = tpu.concatenate %118, %122, %126, %130 in 0 : vector<2x384xf32>, vector<2x384xf32>, vector<2x384xf32>, vector<2x384xf32> -> vector<8x384xf32>
    %132 = arith.truncf %131 : vector<8x384xf32> to vector<8x384xbf16>
    %c0_183 = arith.constant 0 : index
    %c0_184 = arith.constant 0 : index
    %133 = vector.load %arg2[%c0_183, %c0_184] : memref<384x128xbf16, #tpu.memory_space<vmem>>, vector<384x128xbf16>
    %cst_185 = arith.constant dense<0.000000e+00> : vector<8x128xf32>
    %134 = tpu.matmul %132, %133, %cst_185 {dimension_numbers = #tpu.dot_dimension_numbers<[1], [0], [0], [1], [0, 0, 1, 1], [], []>} : vector<8x384xbf16>, vector<384x128xbf16>, vector<8x128xf32> -> vector<8x128xf32>
    %c0_186 = arith.constant 0 : index
    %c128 = arith.constant 128 : index
    %135 = vector.load %arg5[%c0_186, %c128] : memref<1x1024xf32, #tpu.memory_space<vmem>>, vector<1x128xf32>
    %136 = vector.broadcast %135 : vector<1x128xf32> to vector<8x128xf32>
    %137 = arith.addf %134, %136 : vector<8x128xf32>
    %cst_187 = arith.constant 2.000000e-01 : f32
    %138 = vector.broadcast %cst_187 : f32 to vector<8x128xf32>
    %139 = arith.mulf %138, %137 : vector<8x128xf32>
    %140 = arith.maximumf %137, %139 : vector<8x128xf32>
    %141 = vector.extract_strided_slice %140 {offsets = [0, 0], sizes = [2, 128], strides = [1, 1]} : vector<8x128xf32> to vector<2x128xf32>
    %142 = vector.extract_strided_slice %140 {offsets = [2, 0], sizes = [2, 128], strides = [1, 1]} : vector<8x128xf32> to vector<2x128xf32>
    %143 = vector.extract_strided_slice %140 {offsets = [4, 0], sizes = [2, 128], strides = [1, 1]} : vector<8x128xf32> to vector<2x128xf32>
    %144 = vector.extract_strided_slice %140 {offsets = [6, 0], sizes = [2, 128], strides = [1, 1]} : vector<8x128xf32> to vector<2x128xf32>
    %145 = tpu.concatenate %141, %142, %143, %144 in 1 : vector<2x128xf32>, vector<2x128xf32>, vector<2x128xf32>, vector<2x128xf32> -> vector<2x512xf32>
    %146 = arith.truncf %145 : vector<2x512xf32> to vector<2x512xbf16>
    %c0_188 = arith.constant 0 : index
    %c0_189 = arith.constant 0 : index
    %147 = vector.load %arg3[%c0_188, %c0_189] : memref<512x256xbf16, #tpu.memory_space<vmem>>, vector<512x256xbf16>
    %cst_190 = arith.constant dense<0.000000e+00> : vector<2x256xf32>
    %148 = tpu.matmul %146, %147, %cst_190 {dimension_numbers = #tpu.dot_dimension_numbers<[1], [0], [0], [1], [0, 0, 1, 1], [], []>} : vector<2x512xbf16>, vector<512x256xbf16>, vector<2x256xf32> -> vector<2x256xf32>
    %c0_191 = arith.constant 0 : index
    %c256 = arith.constant 256 : index
    %149 = vector.load %arg5[%c0_191, %c256] : memref<1x1024xf32, #tpu.memory_space<vmem>>, vector<1x256xf32>
    %150 = vector.broadcast %149 : vector<1x256xf32> to vector<2x256xf32>
    %151 = arith.addf %148, %150 : vector<2x256xf32>
    %cst_192 = arith.constant 2.000000e-01 : f32
    %152 = vector.broadcast %cst_192 : f32 to vector<2x256xf32>
    %153 = arith.mulf %152, %151 : vector<2x256xf32>
    %154 = arith.maximumf %151, %153 : vector<2x256xf32>
    %155 = arith.truncf %154 : vector<2x256xf32> to vector<2x256xbf16>
    %c0_193 = arith.constant 0 : index
    %c0_194 = arith.constant 0 : index
    %156 = vector.load %arg4[%c0_193, %c0_194] : memref<256x128xbf16, #tpu.memory_space<vmem>>, vector<256x128xbf16>
    %cst_195 = arith.constant dense<0.000000e+00> : vector<2x128xf32>
    %157 = tpu.matmul %155, %156, %cst_195 {dimension_numbers = #tpu.dot_dimension_numbers<[1], [0], [0], [1], [0, 0, 1, 1], [], []>} : vector<2x256xbf16>, vector<256x128xbf16>, vector<2x128xf32> -> vector<2x128xf32>
    %c0_196 = arith.constant 0 : index
    %c512 = arith.constant 512 : index
    %158 = vector.load %arg5[%c0_196, %c512] : memref<1x1024xf32, #tpu.memory_space<vmem>>, vector<1x128xf32>
    %159 = vector.broadcast %158 : vector<1x128xf32> to vector<2x128xf32>
    %160 = arith.addf %157, %159 : vector<2x128xf32>
    %cst_197 = arith.constant 2.000000e-01 : f32
    %161 = vector.broadcast %cst_197 : f32 to vector<2x128xf32>
    %162 = arith.mulf %161, %160 : vector<2x128xf32>
    %163 = arith.maximumf %160, %162 : vector<2x128xf32>
    %c0_198 = arith.constant 0 : index
    %c640 = arith.constant 640 : index
    %164 = vector.load %arg5[%c0_198, %c640] : memref<1x1024xf32, #tpu.memory_space<vmem>>, vector<1x128xf32>
    %165 = vector.broadcast %164 : vector<1x128xf32> to vector<2x128xf32>
    %166 = arith.mulf %163, %165 : vector<2x128xf32>
    %cst_199 = arith.constant dense<0.000000e+00> : vector<2xf32>
    %167 = vector.multi_reduction <add>, %166, %cst_199 [1] : vector<2x128xf32> to vector<2xf32>
    %168 = vector.shape_cast %167 : vector<2xf32> to vector<2x1xf32>
    %c0_200 = arith.constant 0 : index
    %c768 = arith.constant 768 : index
    %169 = vector.load %arg5[%c0_200, %c768] : memref<1x1024xf32, #tpu.memory_space<vmem>>, vector<1x1xf32>
    %170 = vector.broadcast %169 : vector<1x1xf32> to vector<2x1xf32>
    %171 = arith.addf %168, %170 : vector<2x1xf32>
    %cst_201 = arith.constant 0.000000e+00 : f32
    %172 = vector.broadcast %cst_201 : f32 to vector<2x1xf32>
    %173 = arith.subf %172, %171 : vector<2x1xf32>
    %174 = math.exp %173 : vector<2x1xf32>
    %cst_202 = arith.constant 1.000000e+00 : f32
    %175 = vector.broadcast %cst_202 : f32 to vector<2x1xf32>
    %176 = arith.addf %175, %174 : vector<2x1xf32>
    %cst_203 = arith.constant 1.000000e+00 : f32
    %177 = vector.broadcast %cst_203 : f32 to vector<2x1xf32>
    %178 = arith.divf %177, %176 : vector<2x1xf32>
    %c0_204 = arith.constant 0 : index
    %c0_205 = arith.constant 0 : index
    %179 = vector.load %arg6[%c0_204, %c0_205] : memref<2x1xf32, #tpu.memory_space<vmem>>, vector<2x1xf32>
    tpu.vector_store %arg6[%c0_204, %c0_205], %178 {strides = array<i32>} : memref<2x1xf32, #tpu.memory_space<vmem>>, vector<2x1xf32>,
    return
  }
}

</mosaic_0001>

<bundles_post_ra>
// kernel: tpu_custom_call.1
= control target key start
LH: loop header
LB: loop body
LE: loop exit
PB: predicated region body
PF: predicated region fallthrough
CT: control target
= control target key end

     0   :  { %11 = vsyncpa [#allocation3], 0  ;;  %s2848_s0 = inlined_call_operand.hbm [shape: f32[2,3,16,16], index: 0, kind: input, shape index: {}]   ;;  %s2849_s1 = inlined_call_operand.hbm [shape: bf16[144,128], index: 1, kind: input, shape index: {}]   ;;  %s2850_s2 = inlined_call_operand.hbm [shape: bf16[384,128], index: 2, kind: input, shape index: {}]   ;;  %s2851_s3 = inlined_call_operand.hbm [shape: bf16[512,256], index: 3, kind: input, shape index: {}]   ;;  %s2852_s4 = inlined_call_operand.hbm [shape: bf16[256,128], index: 4, kind: input, shape index: {}]   ;;  %s2853_s5 = inlined_call_operand.vmem [shape: f32[1,1024], index: 5, kind: input, shape index: {}]   ;;  %s2854_s6 = inlined_call_operand.vmem [shape: f32[2,1], index: 6, kind: output, shape index: {}]  }
   0x1   :  { %12 = vsyncpa [#allocation5], 0 }
   0x2   :  { %13 = vsyncpa [#allocation8], 0  ;;  %s2418_s21 = smov [#allocation4]   ;;  %s2302_s25 = scalar_lea.hbm %s2849_s1, 1152 }
   0x3   :  { %s31_s22 = sshll.u32 %s2418_s21, 4  ;;  %p2303_p0 = scmp.ne.s32.totalorder %s2849_s1, %s2302_s25  ;;  %s32_s22 = int_to_ptr.vmem [resolvable:$true] %s31_s22 }
   0x4   :  { %p2306_p1 = scmp.lt.u32.totalorder %s2302_s25, %s2849_s1 }
   0x6   :  { %p2308_p2 = pnand %p2306_p1, %p2303_p0 }
   0x8   :  { %2311 = shalt.err (!%p2308_p2)
}
   0x9   :  { %s2312_s30 = scalar_lea.vmem %s32_s22, 1152  ;;  %p2317_p4 = scmp.lt.s32.totalorder %s32_s22, %s32_s22 }
   0xa   :  { %p2313_p3 = scmp.ne.s32.totalorder %s32_s22, %s2312_s30  ;;  %p2318_p5 = scmp.lt.s32.totalorder %s2312_s30, %s2312_s30 }
   0xc   :  { %p2319_p6 = por %p2318_p5, %p2317_p4 }
   0xe   :  { %p2320_p7 = pnand %p2319_p6, %p2313_p3 }
  0x10   :  { %2323 = shalt.err (!%p2320_p7)
}
  0x11   :  { %s2419_s7 = smov 64   ;;  %s2420_s8 = smov 4  }
  0x12   :  { %37 = dma.hbm_to_vmem [thread:$0]  %s2849_s1, 1152, %s32_s22, [#allocation5], %s2419_s7, %s2419_s7, %s2420_s8  }
  0x13   :  { %s2421_s11 = smov [#allocation7]   ;;  %s2422_s13 = smov [#allocation2]  }
  0x14   :  { %s55_s12 = sshll.u32 %s2421_s11, 4  ;;  %s19_s14 = sshll.u32 %s2422_s13, 4  ;;  %s56_s12 = int_to_ptr.vmem [resolvable:$true] %s55_s12  ;;  %s20_s14 = int_to_ptr.vmem [resolvable:$true] %s19_s14 }
  0x15   :  { %s2324_s17 = scalar_lea.hbm %s2851_s3, 8192 }
  0x16   :  { %p2325_p8 = scmp.ne.s32.totalorder %s2851_s3, %s2324_s17  ;;  %p2328_p9 = scmp.lt.u32.totalorder %s2324_s17, %s2851_s3 }
  0x18   :  { %p2330_p10 = pnand %p2328_p9, %p2325_p8 }
  0x1a   :  { %2333 = shalt.err (!%p2330_p10)
}
  0x1b   :  { %s2334_s1 = scalar_lea.vmem %s56_s12, 8192  ;;  %p2339_p12 = scmp.lt.s32.totalorder %s56_s12, %s56_s12 }
  0x1c   :  { %p2335_p11 = scmp.ne.s32.totalorder %s56_s12, %s2334_s1  ;;  %p2340_p13 = scmp.lt.s32.totalorder %s2334_s1, %s2334_s1 }
  0x1e   :  { %p2341_p0 = por %p2340_p13, %p2339_p12 }
  0x20   :  { %p2342_p1 = pnand %p2341_p0, %p2335_p11 }
  0x22   :  { %2345 = shalt.err (!%p2342_p1)
}
  0x23   :  { %s2423_s22 = smov 128   ;;  %s2424_s23 = smov 8  }
  0x24   :  { %61 = dma.hbm_to_vmem [thread:$0]  %s2851_s3, 8192, %s56_s12, [#allocation8], %s2423_s22, %s2423_s22, %s2424_s23  }
  0x25   :  { %s2346_s28 = scalar_lea.hbm %s2848_s0, 1536 }
  0x26   :  { %p2347_p2 = scmp.ne.s32.totalorder %s2848_s0, %s2346_s28  ;;  %p2350_p3 = scmp.lt.u32.totalorder %s2346_s28, %s2848_s0 }
  0x28   :  { %p2352_p4 = pnand %p2350_p3, %p2347_p2 }
  0x2a   :  { %2355 = shalt.err (!%p2352_p4)
}
  0x2b   :  { %s2356_s11 = scalar_lea.vmem %s20_s14, 1536  ;;  %p2361_p6 = scmp.lt.s32.totalorder %s20_s14, %s20_s14 }
  0x2c   :  { %p2357_p5 = scmp.ne.s32.totalorder %s20_s14, %s2356_s11  ;;  %p2362_p7 = scmp.lt.s32.totalorder %s2356_s11, %s2356_s11 }
  0x2e   :  { %p2363_p8 = por %p2362_p7, %p2361_p6 }
  0x30   :  { %p2364_p9 = pnand %p2363_p8, %p2357_p5 }
  0x32   :  { %2367 = shalt.err (!%p2364_p9)
}
  0x33   :  { %25 = dma.hbm_to_vmem [thread:$0]  %s2848_s0, 1536, %s20_s14, [#allocation3], %s2423_s22, %s2423_s22, %s2424_s23  }
  0x34   :  { %s2425_s13 = smov [#allocation6]   ;;  %s2426_s16 = smov [#allocation9]  }
  0x35   :  { %s43_s15 = sshll.u32 %s2425_s13, 4  ;;  %s67_s17 = sshll.u32 %s2426_s16, 4  ;;  %s44_s15 = int_to_ptr.vmem [resolvable:$true] %s43_s15  ;;  %s68_s17 = int_to_ptr.vmem [resolvable:$true] %s67_s17 }
  0x36   :  { %s2368_s20 = scalar_lea.hbm %s2850_s2, 3072 }
  0x37   :  { %p2369_p10 = scmp.ne.s32.totalorder %s2850_s2, %s2368_s20  ;;  %p2372_p11 = scmp.lt.u32.totalorder %s2368_s20, %s2850_s2 }
  0x39   :  { %p2374_p12 = pnand %p2372_p11, %p2369_p10 }
  0x3b   :  { %2377 = shalt.err (!%p2374_p12)
}
  0x3c   :  { %s2378_s0 = scalar_lea.vmem %s44_s15, 3072  ;;  %p2383_p0 = scmp.lt.s32.totalorder %s44_s15, %s44_s15 }
  0x3d   :  { %p2379_p13 = scmp.ne.s32.totalorder %s44_s15, %s2378_s0  ;;  %p2384_p1 = scmp.lt.s32.totalorder %s2378_s0, %s2378_s0 }
  0x3f   :  { %p2385_p2 = por %p2384_p1, %p2383_p0 }
  0x41   :  { %p2386_p3 = pnand %p2385_p2, %p2379_p13 }
  0x43   :  { %2389 = shalt.err (!%p2386_p3)
}
  0x44   :  { %49 = dma.hbm_to_vmem [thread:$0]  %s2850_s2, 3072, %s44_s15, [#allocation5], %s2419_s7, %s2419_s7, %s2420_s8  }
  0x45   :  { %s2390_s27 = scalar_lea.hbm %s2852_s4, 2048 }
  0x46   :  { %p2391_p4 = scmp.ne.s32.totalorder %s2852_s4, %s2390_s27  ;;  %p2394_p5 = scmp.lt.u32.totalorder %s2390_s27, %s2852_s4 }
  0x48   :  { %p2396_p6 = pnand %p2394_p5, %p2391_p4 }
  0x4a   :  { %2399 = shalt.err (!%p2396_p6)
}
  0x4b   :  { %s2400_s10 = scalar_lea.vmem %s68_s17, 2048  ;;  %p2405_p8 = scmp.lt.s32.totalorder %s68_s17, %s68_s17 }
  0x4c   :  { %p2401_p7 = scmp.ne.s32.totalorder %s68_s17, %s2400_s10  ;;  %p2406_p9 = scmp.lt.s32.totalorder %s2400_s10, %s2400_s10 }
  0x4e   :  { %p2407_p10 = por %p2406_p9, %p2405_p8 }
  0x50   :  { %p2408_p11 = pnand %p2407_p10, %p2401_p7 }
  0x52   :  { %2411 = shalt.err (!%p2408_p11)
}
  0x53   :  { %73 = dma.hbm_to_vmem [thread:$0]  %s2852_s4, 2048, %s68_s17, [#allocation8], %s2419_s7, %s2419_s7, %s2420_s8  }
  0x54   :  { %2412 = dma.done.wait [#allocation3], 1536  }
  0x55   :  { %2413 = vsyncadd [#allocation3], 4294965760 }
  0x56   :  { %2414 = dma.done.wait [#allocation5], 4224  }
  0x57   :  { %2415 = vsyncadd [#allocation5], 4294963072 }
  0x58   :  { %2416 = dma.done.wait [#allocation8], 10240  }
  0x59   :  { %2417 = vsyncadd [#allocation8], 4294957056  ;;  %vm109_vm0 = vcmask 1041409   ;;  %v226_v0 = vld [vmem:[#allocation2 + $0x4] sm:$0x1]  ;;  %s2427_s4 = smov 16  }
  0x5a   :  { %v227_v1 = vld [vmem:[#allocation2 + $0x34] sm:$0x1]  ;;  %v487_v3 = vld [vmem:[#allocation2 + $0xc] sm:$0x1]  ;;  %v488_v4 = vld [vmem:[#allocation2 + $0x3c] sm:$0x1] }
  0x5b   :  { %v241_v2 = vrot.slane %v227_v1, 7  ;;  %v502_v5 = vrot.slane %v488_v4, 7  ;;  %v161_v6 = vld [vmem:[#allocation2 + $0x2] sm:$0x1]  ;;  %v162_v7 = vld [vmem:[#allocation2 + $0x32] sm:$0x1] }
  0x5c   :  { %v176_v9 = vrot.slane %v162_v7, 7  ;;  %v422_v10 = vld [vmem:[#allocation2 + $0xa] sm:$0x1]  ;;  %v423_v11 = vld [vmem:[#allocation2 + $0x3a] sm:$0x1]  ;;  %s2428_s8 = smov 32  }
  0x5d   :  { %v242_v8 = vsel %vm109_vm0, %v241_v2, %v226_v0  ;;  %v503_v12 = vsel %vm109_vm0, %v502_v5, %v487_v3  ;;  %v437_v13 = vrot.slane %v423_v11, 7  ;;  %v163_v14 = vld [vmem:[#allocation2 + $0x3] sm:$0x1]  ;;  %v164_v15 = vld [vmem:[#allocation2 + $0x33] sm:$0x1]  ;;  %s2429_s3 = smov 48  }
  0x5e   :  { %v2033_v16 = vpack.i.bf16 %v503_v12, %v242_v8  ;;  %v177_v17 = vsel %vm109_vm0, %v176_v9, %v161_v6  ;;  %v183_v18 = vrot.slane %v164_v15, 7  ;;  %v424_v19 = vld [vmem:[#allocation2 + $0xb] sm:$0x1]  ;;  %v425_v20 = vld [vmem:[#allocation2 + $0x3b] sm:$0x1]  ;;  %s2431_s12 = smov 80  }
  0x5f   :  { %v438_v21 = vsel %vm109_vm0, %v437_v13, %v422_v10  ;;  %v444_v22 = vrot.slane %v425_v20, 7  ;;  %v92_v23 = vld [vmem:[#allocation2] sm:$0x1]  ;;  %v93_v24 = vld [vmem:[#allocation2 + $0x30] sm:$0x1]  ;;  %s2432_s13 = smov 96  }
  0x60   :  { %2034 = vrot.lane.b32.xlu1 %v2033_v16, %s2427_s4  ;;  %v2023_v25 = vpack.i.bf16 %v438_v21, %v177_v17  ;;  %v2546_v26 = vsel %vm109_vm0, %v183_v18, %v163_v14  ;;  %v108_v27 = vrot.slane %v93_v24, 7  ;;  %v291_v28 = vld [vmem:[#allocation2 + $0x6] sm:$0x1]  ;;  %v292_v29 = vld [vmem:[#allocation2 + $0x36] sm:$0x1]  ;;  %v2430_v24 = vmov 0  }
  0x61   :  { %v2549_v30 = vsel %vm109_vm0, %v444_v22, %v424_v19  ;;  %v306_v31 = vrot.slane %v292_v29, 7  ;;  %v99_v32 = vld [vmem:[#allocation2 + $0x11] sm:$0x1]  ;;  %v100_v33 = vld [vmem:[#allocation2 + $0x41] sm:$0x1]  ;;  %746 = vmatprep.subr.bf16.mxu1 %v2430_v24  ;;  %vm647_vm1 = vcmask 1041408  }
  0x62   :  { %2024 = vrot.lane.b32.xlu0 %v2023_v25, %s2427_s4  ;;  %v2028_v34 = vpack.i.bf16 %v2549_v30, %v2546_v26  ;;  %v110_v35 = vsel %vm109_vm0, %v108_v27, %v92_v23  ;;  %v130_v36 = vrot.slane %v100_v33, 7  ;;  %v362_v37 = vld [vmem:[#allocation2 + $0x19] sm:$0x1]  ;;  %v363_v38 = vld [vmem:[#allocation2 + $0x49] sm:$0x1]  ;;  %v2153_v25 = vld [vmem:[#allocation4] sm:$0xff]  }
  0x63   :  { %v307_v39 = vsel %vm109_vm0, %v306_v31, %v291_v28  ;;  %v395_v40 = vrot.slane %v363_v38, 7  ;;  %v228_v41 = vld [vmem:[#allocation2 + $0x5] sm:$0x1]  ;;  %v229_v42 = vld [vmem:[#allocation2 + $0x35] sm:$0x1]  ;;  %747 = vmatpush1.bf16.msra.mxu1 %v2153_v25  ;;  %vm650_vm2 = vcmask 1043456  }
  0x64   :  { %v2038_v43 = vpack.i.bf16 %v307_v39, %v110_v35  ;;  %v2557_v44 = vsel %vm109_vm0, %v130_v36, %v99_v32  ;;  %v248_v45 = vrot.slane %v229_v42, 7  ;;  %v489_v46 = vld [vmem:[#allocation2 + $0xd] sm:$0x1]  ;;  %v490_v47 = vld [vmem:[#allocation2 + $0x3d] sm:$0x1]  ;;  %748 = vmatprep.subr.bf16.mxu1 %v2430_v24  ;;  %vm653_vm3 = vcmask 1045504  }
  0x65   :  { %v2560_v48 = vsel %vm109_vm0, %v395_v40, %v362_v37  ;;  %v509_v49 = vrot.slane %v490_v47, 7  ;;  %v356_v50 = vld [vmem:[#allocation2 + $0x8] sm:$0x1]  ;;  %v357_v51 = vld [vmem:[#allocation2 + $0x38] sm:$0x1]  ;;  %vm147_vm4 = vcmask 130048  }
  0x66   :  { %2029 = vrot.lane.b32.xlu0 %v2028_v34, %s2428_s8  ;;  %2039 = vrot.lane.b32.xlu1 %v2038_v43, %s2427_s4  ;;  %v2043_v52 = vpack.i.bf16 %v2560_v48, %v2557_v44  ;;  %v2567_v53 = vsel %vm109_vm0, %v248_v45, %v228_v41  ;;  %v371_v54 = vrot.slane %v357_v51, 7  ;;  %v552_v55 = vld [vmem:[#allocation2 + $0xe] sm:$0x1]  ;;  %v553_v56 = vld [vmem:[#allocation2 + $0x3e] sm:$0x1]  ;;  %vm149_vm5 = vcmask 261120  }
  0x67   :  { %v2570_v57 = vsel %vm109_vm0, %v509_v49, %v489_v46  ;;  %v567_v58 = vrot.slane %v553_v56, 7  ;;  %v94_v59 = vld [vmem:[#allocation2 + $0x1] sm:$0x1]  ;;  %v95_v60 = vld [vmem:[#allocation2 + $0x31] sm:$0x1]  ;;  %v2154_v42 = vld [vmem:[#allocation4 + $0x8] sm:$0xff]  }
  0x68   :  { %v2048_v61 = vpack.i.bf16 %v2570_v57, %v2567_v53  ;;  %v372_v62 = vsel %vm109_vm0, %v371_v54, %v356_v50  ;;  %v116_v63 = vrot.slane %v95_v60, 7  ;;  %v293_v0 = vld [vmem:[#allocation2 + $0x7] sm:$0x1]  ;;  %v294_v1 = vld [vmem:[#allocation2 + $0x37] sm:$0x1]  ;;  %749 = vmatpush1.bf16.msra.mxu1 %v2154_v42  ;;  %vm151_vm6 = vcmask 392192  }
  0x69   :  { %v568_v2 = vsel %vm109_vm0, %v567_v58, %v552_v55  ;;  %v313_v3 = vrot.slane %v294_v1, 7  ;;  %v165_v4 = vld [vmem:[#allocation2 + $0x12] sm:$0x1]  ;;  %v166_v5 = vld [vmem:[#allocation2 + $0x42] sm:$0x1]  ;;  %750 = vmatprep.subr.bf16.mxu1 %v2430_v24  ;;  %vm153_vm7 = vcmask 523264  }
  0x6a   :  { %2044 = vrot.lane.b32.xlu0 %v2043_v52, %s2429_s3  ;;  %2049 = vrot.lane.b32.xlu1 %v2048_v61, %s2428_s8  ;;  %v2053_v6 = vpack.i.bf16 %v568_v2, %v372_v62  ;;  %v2579_v7 = vsel %vm109_vm0, %v116_v63, %v94_v59  ;;  %v193_v8 = vrot.slane %v166_v5, 7  ;;  %v426_v9 = vld [vmem:[#allocation2 + $0x1a] sm:$0x1]  ;;  %v427_v10 = vld [vmem:[#allocation2 + $0x4a] sm:$0x1]  ;;  %v2155_v62 = vld [vmem:[#allocation4 + $0x10] sm:$0xff]  }
  0x6b   :  { %v2582_v11 = vsel %vm109_vm0, %v313_v3, %v293_v0  ;;  %v454_v12 = vrot.slane %v427_v10, 7  ;;  %v167_v13 = vld [vmem:[#allocation2 + $0x13] sm:$0x1]  ;;  %v168_v14 = vld [vmem:[#allocation2 + $0x43] sm:$0x1]  ;;  %vm155_vm8 = vcmask 654336  }
  0x6c   :  { %v2058_v15 = vpack.i.bf16 %v2582_v11, %v2579_v7  ;;  %v194_v16 = vsel %vm109_vm0, %v193_v8, %v165_v4  ;;  %v200_v17 = vrot.slane %v168_v14, 7  ;;  %v428_v18 = vld [vmem:[#allocation2 + $0x1b] sm:$0x1]  ;;  %v429_v19 = vld [vmem:[#allocation2 + $0x4b] sm:$0x1]  ;;  %751 = vmatpush1.bf16.msra.mxu1 %v2155_v62  ;;  %v2157_v42 = vld [vmem:[#allocation4 + $0x20] sm:$0xff]  }
  0x6d   :  { %v455_v20 = vsel %vm109_vm0, %v454_v12, %v426_v9  ;;  %v461_v21 = vrot.slane %v429_v19, 7  ;;  %v358_v22 = vld [vmem:[#allocation2 + $0x9] sm:$0x1]  ;;  %v359_v23 = vld [vmem:[#allocation2 + $0x39] sm:$0x1]  ;;  %752 = vmatprep.subr.bf16.mxu1 %v2430_v24  ;;  %vm157_vm9 = vcmask 785408  }
  0x6e   :  { %2054 = vrot.lane.b32.xlu0 %v2053_v6, %s2427_s4  ;;  %2059 = vrot.lane.b32.xlu1 %v2058_v15, %s2428_s8  ;;  %v2063_v27 = vpack.i.bf16 %v455_v20, %v194_v16  ;;  %v201_v28 = vsel %vm109_vm0, %v200_v17, %v167_v13  ;;  %v378_v29 = vrot.slane %v359_v23, 7  ;;  %v554_v31 = vld [vmem:[#allocation2 + $0xf] sm:$0x1]  ;;  %v555_v32 = vld [vmem:[#allocation2 + $0x3f] sm:$0x1]  ;;  %vm159_vm10 = vcmask 916480  }
  0x6f   :  { %v462_v33 = vsel %vm109_vm0, %v461_v21, %v428_v18  ;;  %v574_v34 = vrot.slane %v555_v32, 7  ;;  %v230_v35 = vld [vmem:[#allocation2 + $0x14] sm:$0x1]  ;;  %v231_v36 = vld [vmem:[#allocation2 + $0x44] sm:$0x1]  ;;  %v2156_v19 = vld [vmem:[#allocation4 + $0x18] sm:$0xff]  }
  0x70   :  { %v2068_v37 = vpack.i.bf16 %v462_v33, %v201_v28  ;;  %v2594_v38 = vsel %vm109_vm0, %v378_v29, %v358_v22  ;;  %v258_v39 = vrot.slane %v231_v36, 7  ;;  %v491_v40 = vld [vmem:[#allocation2 + $0x1c] sm:$0x1]  ;;  %v492_v41 = vld [vmem:[#allocation2 + $0x4c] sm:$0x1]  ;;  %753 = vmatpush1.bf16.msra.mxu1 %v2156_v19  ;;  %vm2435_vm11 = vmmov 0  }
  0x71   :  { %v575_v43 = vsel %vm109_vm0, %v574_v34, %v554_v31  ;;  %v519_v45 = vrot.slane %v492_v41, 7  ;;  %v232_v46 = vld [vmem:[#allocation2 + $0x15] sm:$0x1]  ;;  %v233_v47 = vld [vmem:[#allocation2 + $0x45] sm:$0x1]  ;;  %754 = vmatprep.subr.bf16.mxu1 %v2430_v24  ;;  %vm1798_vm12 = vcmask 1024  }
  0x72   :  { %2064 = vrot.lane.b32.xlu0 %v2063_v27, %s2419_s7  ;;  %2069 = vrot.lane.b32.xlu1 %v2068_v37, %s2429_s3  ;;  %v2073_v49 = vpack.i.bf16 %v575_v43, %v2594_v38  ;;  %v265_v50 = vrot.slane %v233_v47, 7  ;;  %v297_v51 = vld [vmem:[#allocation2 + $0x17] sm:$0x1]  ;;  %v298_v52 = vld [vmem:[#allocation2 + $0x47] sm:$0x1]  ;;  %v259_v54 = vsel %vm109_vm0, %v258_v39, %v230_v35 }
  0x73   :  { %v520_v55 = vsel %vm109_vm0, %v519_v45, %v491_v40  ;;  %v330_v56 = vrot.slane %v298_v52, 7  ;;  %v494_v58 = vld [vmem:[#allocation2 + $0x4d] sm:$0x1]  ;;  %v97_v60 = vld [vmem:[#allocation2 + $0x10] sm:$0x1] }
  0x74   :  { %v2604_v59 = vsel %vm109_vm0, %v265_v50, %v232_v46  ;;  %v98_v61 = vld [vmem:[#allocation2 + $0x40] sm:$0x1]  ;;  %v295_v1 = vld [vmem:[#allocation2 + $0x16] sm:$0x1]  ;;  %v296_v2 = vld [vmem:[#allocation2 + $0x46] sm:$0x1]  ;;  %v2083_v3 = vpack.i.bf16 %v520_v55, %v259_v54  ;;  %755 = vmatpush1.bf16.msra.mxu1 %v2157_v42 }
  0x75   :  { %v2608_v63 = vsel %vm109_vm0, %v330_v56, %v297_v51  ;;  %v123_v0 = vrot.slane %v98_v61, 7  ;;  %v493_v5 = vld [vmem:[#allocation2 + $0x1d] sm:$0x1]  ;;  %v526_v6 = vrot.slane %v494_v58, 7  ;;  %v323_v8 = vrot.slane %v296_v2, 7  ;;  %756 = vmatprep.subr.bf16.mxu1 %v2430_v24 }
  0x76   :  { %2074 = vrot.lane.b32.xlu0 %v2073_v49, %s2428_s8  ;;  %2079 = vrot.lane.b32.xlu1 %v2068_v37, %s2431_s12  ;;  %v2088_v4 = vpack.i.bf16 %v2608_v63, %v2604_v59  ;;  %v105_v9 = vld [vmem:[#allocation2 + $0x51] sm:$0x1]  ;;  %v104_v12 = vld [vmem:[#allocation2 + $0x21] sm:$0x1]  ;;  %v367_v14 = vld [vmem:[#allocation2 + $0x59] sm:$0x1]  ;;  %v2113_v61 = vpack.i.bf16 %v2608_v63, %v2557_v44 }
  0x77   :  { %v124_v10 = vsel %vm109_vm0, %v123_v0, %v97_v60  ;;  %v144_v13 = vrot.slane %v105_v9, 7  ;;  %v324_v15 = vsel %vm109_vm0, %v323_v8, %v295_v1  ;;  %v366_v16 = vld [vmem:[#allocation2 + $0x29] sm:$0x1]  ;;  %v412_v17 = vrot.slane %v367_v14, 7  ;;  %v361_v18 = vld [vmem:[#allocation2 + $0x48] sm:$0x1] }
  0x78   :  { %v557_v20 = vld [vmem:[#allocation2 + $0x4e] sm:$0x1]  ;;  %v2093_v21 = vpack.i.bf16 %v324_v15, %v124_v10  ;;  %v360_v22 = vld [vmem:[#allocation2 + $0x18] sm:$0x1]  ;;  %v388_v23 = vrot.slane %v361_v18, 7  ;;  %v527_v28 = vsel %vm109_vm0, %v526_v6, %v493_v5 }
  0x79   :  { %v556_v25 = vld [vmem:[#allocation2 + $0x1e] sm:$0x1]  ;;  %v170_v27 = vld [vmem:[#allocation2 + $0x52] sm:$0x1]  ;;  %v2621_v29 = vsel %vm109_vm0, %v144_v13, %v104_v12  ;;  %v2624_v31 = vsel %vm109_vm0, %v412_v17, %v366_v16  ;;  %v584_v32 = vrot.slane %v557_v20, 7  ;;  %v2103_v43 = vpack.i.bf16 %v527_v28, %v2604_v59  ;;  %v2158_v63 = vld [vmem:[#allocation4 + $0x28] sm:$0xff]  }
  0x7a   :  { %2084 = vrot.lane.b32.xlu0 %v2083_v3, %s2419_s7  ;;  %2089 = vrot.lane.b32.xlu1 %v2088_v4, %s2429_s3  ;;  %v169_v33 = vld [vmem:[#allocation2 + $0x22] sm:$0x1]  ;;  %v431_v34 = vld [vmem:[#allocation2 + $0x5a] sm:$0x1]  ;;  %v210_v35 = vrot.slane %v170_v27, 7  ;;  %v2098_v45 = vpack.i.bf16 %v2624_v31, %v2621_v29  ;;  %v389_v50 = vsel %vm109_vm0, %v388_v23, %v360_v22 }
  0x7b   :  { %v430_v36 = vld [vmem:[#allocation2 + $0x2a] sm:$0x1]  ;;  %v471_v37 = vrot.slane %v431_v34, 7  ;;  %v172_v39 = vld [vmem:[#allocation2 + $0x53] sm:$0x1]  ;;  %v585_v51 = vsel %vm109_vm0, %v584_v32, %v556_v25  ;;  %757 = vmatpush1.bf16.msra.mxu1 %v2158_v63 }
  0x7c   :  { %v171_v40 = vld [vmem:[#allocation2 + $0x23] sm:$0x1]  ;;  %v433_v41 = vld [vmem:[#allocation2 + $0x5b] sm:$0x1]  ;;  %v217_v46 = vrot.slane %v172_v39, 7  ;;  %v211_v55 = vsel %vm109_vm0, %v210_v35, %v169_v33  ;;  %v2108_v3 = vpack.i.bf16 %v585_v51, %v389_v50  ;;  %758 = vmatprep.subr.bf16.mxu1 %v2430_v24 }
  0x7d   :  { %v478_v47 = vrot.slane %v433_v41, 7  ;;  %v559_v49 = vld [vmem:[#allocation2 + $0x4f] sm:$0x1]  ;;  %v432_v52 = vld [vmem:[#allocation2 + $0x2b] sm:$0x1]  ;;  %v472_v56 = vsel %vm109_vm0, %v471_v37, %v430_v36 }
  0x7e   :  { %579 = vrot.lane.b32.xlu0 %v527_v28, %s2429_s3  ;;  %2094 = vrot.lane.b32.xlu1 %v2093_v21, %s2419_s7  ;;  %v235_v54 = vld [vmem:[#allocation2 + $0x54] sm:$0x1]  ;;  %v558_v58 = vld [vmem:[#allocation2 + $0x1f] sm:$0x1]  ;;  %v591_v59 = vrot.slane %v559_v49, 7  ;;  %v218_v4 = vsel %vm109_vm0, %v217_v46, %v171_v40  ;;  %v2118_v12 = vpack.i.bf16 %v472_v56, %v211_v55 }
  0x7f   :  { %v496_v60 = vld [vmem:[#allocation2 + $0x5c] sm:$0x1]  ;;  %v275_v62 = vrot.slane %v235_v54, 7  ;;  %v236_v1 = vld [vmem:[#allocation2 + $0x25] sm:$0x1]  ;;  %v2643_v5 = vsel %vm109_vm0, %v478_v47, %v432_v52  ;;  %v619_v17 = vrot.slane %v218_v4, 6 }
  0x80   :  { %v536_v0 = vrot.slane %v496_v60, 7  ;;  %v237_v2 = vld [vmem:[#allocation2 + $0x55] sm:$0x1]  ;;  %v234_v6 = vld [vmem:[#allocation2 + $0x24] sm:$0x1]  ;;  %v634_v16 = vrot.slane %v2643_v5, 6  ;;  %v2123_v22 = vpack.i.bf16 %v2643_v5, %v218_v4  ;;  %v592_v23 = vsel %vm109_vm0, %v591_v59, %v558_v58 }
  0x81   :  { %v495_v8 = vld [vmem:[#allocation2 + $0x2c] sm:$0x1]  ;;  %v282_v9 = vrot.slane %v237_v2, 7  ;;  %v301_v10 = vld [vmem:[#allocation2 + $0x27] sm:$0x1]  ;;  %v2159_v21 = vld [vmem:[#allocation4 + $0x30] sm:$0xff]   ;;  %v276_v37 = vsel %vm109_vm0, %v275_v62, %v234_v6  ;;  %v2128_v47 = vpack.i.bf16 %v592_v23, %v2560_v48  ;;  %v649_v54 = vsel %vm647_vm1, %v2621_v29, %v619_v17 }
  0x82   :  { %2099 = vrot.lane.b32.xlu0 %v2098_v45, %s2432_s13  ;;  %2104 = vrot.lane.b32.xlu1 %v2103_v43, %s2431_s12  ;;  %v302_v44 = vld [vmem:[#allocation2 + $0x57] sm:$0x1]  ;;  %v497_v14 = vld [vmem:[#allocation2 + $0x2d] sm:$0x1]  ;;  %v498_v15 = vld [vmem:[#allocation2 + $0x5d] sm:$0x1]  ;;  %v537_v39 = vsel %vm109_vm0, %v536_v0, %v495_v8  ;;  %v657_v29 = vsel %vm647_vm1, %v2624_v31, %v634_v16 }
  0x83   :  { %v347_v13 = vrot.slane %v302_v44, 7  ;;  %v283_v18 = vsel %vm109_vm0, %v282_v9, %v236_v1  ;;  %v543_v19 = vrot.slane %v498_v15, 7  ;;  %v103_v20 = vld [vmem:[#allocation2 + $0x50] sm:$0x1]  ;;  %v300_v28 = vld [vmem:[#allocation2 + $0x56] sm:$0x1]  ;;  %759 = vmatpush1.bf16.msra.mxu1 %v2159_v21  ;;  %v2133_v49 = vpack.i.bf16 %v537_v39, %v276_v37 }
  0x84   :  { %v624_v27 = vrot.slane %v283_v18, 4  ;;  %v137_v34 = vrot.slane %v103_v20, 7  ;;  %v340_v35 = vrot.slane %v300_v28, 7  ;;  %v365_v36 = vld [vmem:[#allocation2 + $0x58] sm:$0x1]  ;;  %760 = vmatprep.subr.bf16.mxu1 %v2430_v24  ;;  %v2161_v59 = vld [vmem:[#allocation4 + $0x40] sm:$0xff]  }
  0x85   :  { %v348_v25 = vsel %vm109_vm0, %v347_v13, %v301_v10  ;;  %v544_v33 = vsel %vm109_vm0, %v543_v19, %v497_v14  ;;  %v405_v41 = vrot.slane %v365_v36, 7  ;;  %v561_v42 = vld [vmem:[#allocation2 + $0x5e] sm:$0x1]  ;;  %v102_v45 = vld [vmem:[#allocation2 + $0x20] sm:$0x1] }
  0x86   :  { %2109 = vrot.lane.b32.xlu0 %v2108_v3, %s2419_s7  ;;  %2114 = vrot.lane.b32.xlu1 %v2113_v61, %s2431_s12  ;;  %v629_v32 = vrot.slane %v348_v25, 2  ;;  %v639_v40 = vrot.slane %v544_v33, 4  ;;  %v601_v43 = vrot.slane %v561_v42, 7  ;;  %v299_v46 = vld [vmem:[#allocation2 + $0x26] sm:$0x1]  ;;  %s2433_s7 = smov 112   ;;  %v2138_v55 = vpack.i.bf16 %v348_v25, %v283_v18 }
  0x87   :  { %v364_v50 = vld [vmem:[#allocation2 + $0x28] sm:$0x1]  ;;  %v560_v51 = vld [vmem:[#allocation2 + $0x2e] sm:$0x1]  ;;  %v2160_v52 = vld [vmem:[#allocation4 + $0x38] sm:$0xff]   ;;  %v138_v56 = vsel %vm109_vm0, %v137_v34, %v102_v45  ;;  %v341_v58 = vsel %vm109_vm0, %v340_v35, %v299_v46  ;;  %v652_v1 = vsel %vm650_vm2, %v649_v54, %v624_v27 }
  0x88   :  { %v562_v60 = vld [vmem:[#allocation2 + $0x2f] sm:$0x1]  ;;  %v406_v48 = vsel %vm109_vm0, %v405_v41, %v364_v50  ;;  %v602_v61 = vsel %vm109_vm0, %v601_v43, %v560_v51  ;;  %761 = vmatpush1.bf16.msra.mxu1 %v2160_v52  ;;  %v563_v62 = vld [vmem:[#allocation2 + $0x5f] sm:$0x1]  ;;  %v2143_v2 = vpack.i.bf16 %v341_v58, %v138_v56  ;;  %v659_v6 = vsel %vm650_vm2, %v657_v29, %v639_v40 }
  0x89   :  { %762 = vmatprep.subr.bf16.mxu1 %v2430_v24  ;;  %v608_v0 = vrot.slane %v563_v62, 7  ;;  %v2162_v3 = vld [vmem:[#allocation6 + $0x40] sm:$0xff]   ;;  %v2148_v4 = vpack.i.bf16 %v602_v61, %v406_v48  ;;  %v655_v31 = vsel %vm653_vm3, %v652_v1, %v629_v32 }
  0x8a   :  { %2119 = vrot.lane.b32.xlu0 %v2118_v12, %s2433_s7  ;;  %2124 = vrot.lane.b32.xlu1 %v2123_v22, %s2432_s13 }
  0x8b   :  { %v609_v5 = vsel %vm109_vm0, %v608_v0, %v562_v60 }
  0x8c   :  { %763 = vmatpush1.bf16.msra.mxu1 %v2161_v59  ;;  %v644_v8 = vrot.slane %v609_v5, 2 }
  0x8d   :  { %1926 = vmatprep.subr.bf16.mxu1 %v2162_v3 }
  0x8e   :  { %2129 = vrot.lane.b32.xlu0 %v2128_v47, %s2431_s12  ;;  %2134 = vrot.lane.b32.xlu1 %v2133_v49, %s2433_s7  ;;  %v661_v24 = vsel %vm653_vm3, %v659_v6, %v644_v8 }
  0x8f   :  { %v663_v9 = vpack.c.bf16 %v661_v24, %v655_v31 }
  0x91   :  { %1817 = vmatprep.mubr.msk.bf16.mxu1 %vm147_vm4, %v663_v9 }
  0x92   :  { %2139 = vrot.lane.b32.xlu0 %v2138_v55, %s2432_s13  ;;  %596 = vrot.lane.b32.xlu1 %v544_v33, %s2432_s13 }
  0x96   :  { %2144 = vrot.lane.b32.xlu0 %v2143_v2, %s2433_s7  ;;  %2149 = vrot.lane.b32.xlu1 %v2148_v4, %s2433_s7 }
  0xd2   :  { %v2035_v10 = vpop.permute.xlu1 %2034 }
  0xd3   :  { %v2037_v23 = vunpack.i.h.bf16 %v2035_v10  ;;  %v2036_v27 = vunpack.i.l.bf16 %v2035_v10 }
  0xd4   :  { %v2025_v44 = vpop.permute.xlu0 %2024 }
  0xd5   :  { %v2027_v25 = vunpack.i.h.bf16 %v2025_v44  ;;  %v2026_v28 = vunpack.i.l.bf16 %v2025_v44  ;;  %v545_v43 = vsel %vm147_vm4, %v2549_v30, %v2037_v23  ;;  %v284_v49 = vsel %vm147_vm4, %v2546_v26, %v2036_v27 }
  0xd7   :  { %v480_v45 = vsel %vm147_vm4, %v2594_v38, %v2027_v25  ;;  %v219_v50 = vsel %vm147_vm4, %v2579_v7, %v2026_v28 }
  0xd8   :  { %v2030_v63 = vpop.permute.xlu0 %2029  ;;  %v2040_v12 = vpop.permute.xlu1 %2039 }
  0xd9   :  { %v2032_v32 = vunpack.i.h.bf16 %v2030_v63  ;;  %v2031_v35 = vunpack.i.l.bf16 %v2030_v63  ;;  %v2042_v36 = vunpack.i.h.bf16 %v2040_v12  ;;  %v2041_v37 = vunpack.i.l.bf16 %v2040_v12 }
  0xdb   :  { %v481_v51 = vsel %vm149_vm5, %v480_v45, %v2032_v32  ;;  %v220_v30 = vsel %vm149_vm5, %v219_v50, %v2031_v35  ;;  %v349_v38 = vsel %vm147_vm4, %v2567_v53, %v2042_v36  ;;  %v148_v56 = vsel %vm147_vm4, 0.0, %v2041_v37 }
  0xdc   :  { %v2045_v13 = vpop.permute.xlu0 %2044  ;;  %v2050_v14 = vpop.permute.xlu1 %2049 }
  0xdd   :  { %v2047_v39 = vunpack.i.h.bf16 %v2045_v13  ;;  %v2046_v40 = vunpack.i.l.bf16 %v2045_v13  ;;  %v2052_v41 = vunpack.i.h.bf16 %v2050_v14  ;;  %v2051_v42 = vunpack.i.l.bf16 %v2050_v14 }
  0xdf   :  { %v482_v58 = vsel %vm151_vm6, %v481_v51, %v2047_v39  ;;  %v221_v26 = vsel %vm151_vm6, %v220_v30, %v2046_v40  ;;  %v546_v7 = vsel %vm149_vm5, %v545_v43, %v2052_v41  ;;  %v285_v59 = vsel %vm149_vm5, %v284_v49, %v2051_v42 }
  0xe0   :  { %v2681_v15 = vpop.permute.xlu0 %2054  ;;  %v2060_v16 = vpop.permute.xlu1 %2059 }
  0xe1   :  { %v2056_v46 = vunpack.i.l.bf16 %v2681_v15  ;;  %v2061_v47 = vunpack.i.l.bf16 %v2060_v16  ;;  %v2062_v52 = vunpack.i.h.bf16 %v2060_v16  ;;  %v2057_v60 = vunpack.i.h.bf16 %v2681_v15 }
  0xe3   :  { %v415_v48 = vsel %vm147_vm4, %v2582_v11, %v2056_v46  ;;  %v150_v61 = vsel %vm149_vm5, %v148_v56, %v2061_v47  ;;  %v350_v29 = vsel %vm149_vm5, %v349_v38, %v2062_v52  ;;  %v610_v10 = vsel %vm147_vm4, %v2570_v57, %v2057_v60 }
  0xe4   :  { %v2683_v17 = vpop.permute.xlu0 %2064  ;;  %v2685_v18 = vpop.permute.xlu1 %2069  ;;  %v152_v31 = vsel %vm151_vm6, %v150_v61, 0.0 }
  0xe5   :  { %v2067_v62 = vunpack.i.h.bf16 %v2683_v17  ;;  %v2066_v53 = vunpack.i.l.bf16 %v2683_v17  ;;  %v2072_v0 = vunpack.i.h.bf16 %v2685_v18  ;;  %v2071_v1 = vunpack.i.l.bf16 %v2685_v18 }
  0xe7   :  { %v222_v44 = vsel %vm153_vm7, %v221_v26, %v2066_v53  ;;  %v483_v63 = vsel %vm153_vm7, %v482_v58, %v2067_v62  ;;  %v286_v14 = vsel %vm151_vm6, %v285_v59, %v2071_v1  ;;  %v547_v15 = vsel %vm151_vm6, %v546_v7, %v2072_v0 }
  0xe8   :  { %v2687_v19 = vpop.permute.xlu0 %2074  ;;  %v2689_v20 = vpop.permute.xlu1 %2079 }
  0xe9   :  { %v2076_v2 = vunpack.i.l.bf16 %v2687_v19  ;;  %v2077_v11 = vunpack.i.h.bf16 %v2687_v19  ;;  %v2082_v5 = vunpack.i.h.bf16 %v2689_v20  ;;  %v2081_v6 = vunpack.i.l.bf16 %v2689_v20 }
  0xeb   :  { %v416_v16 = vsel %vm149_vm5, %v415_v48, %v2076_v2  ;;  %v484_v57 = vsel %vm155_vm8, %v483_v63, %v2082_v5  ;;  %v223_v20 = vsel %vm155_vm8, %v222_v44, %v2081_v6 }
  0xec   :  { %v2691_v21 = vpop.permute.xlu0 %2084  ;;  %v2693_v22 = vpop.permute.xlu1 %2089 }
  0xed   :  { %v2086_v8 = vunpack.i.l.bf16 %v2691_v21  ;;  %v2087_v24 = vunpack.i.h.bf16 %v2691_v21  ;;  %v2092_v9 = vunpack.i.h.bf16 %v2693_v22  ;;  %v2091_v12 = vunpack.i.l.bf16 %v2693_v22 }
  0xee   :  { %v611_v22 = vsel %vm149_vm5, %v610_v10, %v2077_v11 }
  0xef   :  { %v287_v21 = vsel %vm153_vm7, %v286_v14, %v2086_v8  ;;  %v548_v23 = vsel %vm153_vm7, %v547_v15, %v2087_v24  ;;  %v417_v25 = vsel %vm151_vm6, %v416_v16, %v2092_v9  ;;  %v351_v32 = vsel %vm151_vm6, %v350_v29, %v2091_v12 }
  0xf0   :  { %v2695_v33 = vpop.permute.xlu0 %579  ;;  %v2697_v34 = vpop.permute.xlu1 %2094 }
  0xf1   :  { %v2096_v13 = vunpack.i.l.bf16 %v2697_v34  ;;  %v2097_v17 = vunpack.i.h.bf16 %v2697_v34  ;;  %v612_v34 = vsel %vm151_vm6, %v611_v22, %v2695_v33 }
  0xf3   :  { %v154_v35 = vsel %vm153_vm7, %v152_v31, %v2096_v13  ;;  %v352_v37 = vsel %vm153_vm7, %v351_v32, %v2097_v17 }
  0xf4   :  { %v2709_v54 = vpop.permute.xlu0 %2099  ;;  %v2711_v55 = vpop.permute.xlu1 %2104 }
  0xf5   :  { %v2102_v27 = vunpack.i.h.bf16 %v2709_v54  ;;  %v2101_v28 = vunpack.i.l.bf16 %v2709_v54  ;;  %v2106_v36 = vunpack.i.l.bf16 %v2711_v55  ;;  %v2107_v39 = vunpack.i.h.bf16 %v2711_v55 }
  0xf7   :  { %v224_v33 = vsel %vm157_vm9, %v223_v20, %v2101_v28  ;;  %v485_v50 = vsel %vm157_vm9, %v484_v57, %v2102_v27  ;;  %v288_v54 = vsel %vm155_vm8, %v287_v21, %v2106_v36  ;;  %v549_v56 = vsel %vm155_vm8, %v548_v23, %v2107_v39  ;;  %v2165_v39 = vld [vmem:[#allocation6 + $0x8] sm:$0xff]  }
  0xf8   :  { %v2731_v3 = vpop.permute.xlu0 %2109  ;;  %v2733_v4 = vpop.permute.xlu1 %2114 }
  0xf9   :  { %v2116_v40 = vunpack.i.l.bf16 %v2733_v4  ;;  %v2111_v45 = vunpack.i.l.bf16 %v2731_v3  ;;  %v2112_v51 = vunpack.i.h.bf16 %v2731_v3  ;;  %v2117_v55 = vunpack.i.h.bf16 %v2733_v4 }
  0xfb   :  { %v156_v58 = vsel %vm155_vm8, %v154_v35, %v2116_v40  ;;  %v418_v48 = vsel %vm153_vm7, %v417_v25, %v2111_v45  ;;  %v613_v2 = vsel %vm153_vm7, %v612_v34, %v2112_v51  ;;  %v353_v4 = vsel %vm155_vm8, %v352_v37, %v2117_v55  ;;  %v2163_v35 = vld [vmem:[#allocation6] sm:$0xff]   ;;  %v2164_v37 = vld [vmem:[#allocation6 + $0x48] sm:$0xff]   ;;  %v2166_v40 = vld [vmem:[#allocation6 + $0x50] sm:$0xff]  }
  0xfc   :  { %v2120_v18 = vpop.permute.xlu0 %2119  ;;  %v2125_v19 = vpop.permute.xlu1 %2124  ;;  %v158_v3 = vsel %vm157_vm9, %v156_v58, 0.0  ;;  %v2170_v45 = vld [vmem:[#allocation6 + $0x60] sm:$0xff]   ;;  %v2176_v51 = vld [vmem:[#allocation6 + $0x78] sm:$0xff]  }
  0xfd   :  { %v2126_v41 = vunpack.i.l.bf16 %v2125_v19  ;;  %v2122_v46 = vunpack.i.h.bf16 %v2120_v18  ;;  %v2121_v47 = vunpack.i.l.bf16 %v2120_v18  ;;  %v2127_v52 = vunpack.i.h.bf16 %v2125_v19  ;;  %v2186_v55 = vld [vmem:[#allocation7 + $0x4] ss:$8 sps:$4 sm:$0xff]  }
  0xfe   :  { %1508 = vmatprep.subr.bf16.mxu0 %v2186_v55  ;;  %v2192_v58 = vld [vmem:[#allocation7 + $0x24] ss:$8 sps:$4 sm:$0xff]   ;;  %v2224_v55 = vld [vmem:[#allocation7 + $0xc0] ss:$8 sps:$4 sm:$0xff]  }
  0xff   :  { %v289_v26 = vsel %vm157_vm9, %v288_v54, %v2126_v41  ;;  %v225_v61 = vsel %vm159_vm10, %v224_v33, %v2121_v47  ;;  %v486_v62 = vsel %vm159_vm10, %v485_v50, %v2122_v46  ;;  %v550_v29 = vsel %vm157_vm9, %v549_v56, %v2127_v52  ;;  %v2167_v41 = vld [vmem:[#allocation6 + $0x10] sm:$0xff]   ;;  %v2171_v46 = vld [vmem:[#allocation6 + $0x20] sm:$0xff]   ;;  %v2172_v47 = vld [vmem:[#allocation6 + $0x68] sm:$0xff]  }
 0x100   :  { %v2130_v42 = vpop.permute.xlu0 %2129  ;;  %v2135_v43 = vpop.permute.xlu1 %2134  ;;  %v618_v6 = vrot.slane %v225_v61, 6  ;;  %v633_v8 = vrot.slane %v486_v62, 6  ;;  %v2174_v33 = vld [vmem:[#allocation6 + $0x70] sm:$0xff]   ;;  %v2177_v52 = vld [vmem:[#allocation6 + $0x38] sm:$0xff]   ;;  %v2434_v54 = vmov 0.0  }
 0x101   :  { %v2136_v49 = vunpack.i.l.bf16 %v2135_v43  ;;  %v2132_v30 = vunpack.i.h.bf16 %v2130_v42  ;;  %v2137_v38 = vunpack.i.h.bf16 %v2135_v43  ;;  %v2131_v7 = vunpack.i.l.bf16 %v2130_v42  ;;  %v2168_v42 = vld [vmem:[#allocation6 + $0x58] sm:$0xff]   ;;  %v2175_v50 = vld [vmem:[#allocation6 + $0x30] sm:$0xff]  }
 0x102   :  { %v2169_v43 = vld [vmem:[#allocation6 + $0x18] sm:$0xff]  }
 0x103   :  { %v290_v53 = vsel %vm159_vm10, %v289_v26, %v2136_v49  ;;  %v551_v11 = vsel %vm159_vm10, %v550_v29, %v2137_v38  ;;  %v614_v5 = vsel %vm155_vm8, %v613_v2, %v2132_v30  ;;  %v419_v31 = vsel %vm155_vm8, %v418_v48, %v2131_v7  ;;  %v2173_v49 = vld [vmem:[#allocation6 + $0x28] sm:$0xff]   ;;  %v2189_v38 = vld [vmem:[#allocation7 + $0x14] ss:$8 sps:$4 sm:$0xff]   ;;  %v2191_v56 = vld [vmem:[#allocation7 + $0x10] ss:$8 sps:$4 sm:$0xff]  }
 0x104   :  { %v2140_v59 = vpop.permute.xlu0 %2139  ;;  %v597_v60 = vpop.permute.xlu1 %596  ;;  %v623_v24 = vrot.slane %v290_v53, 4  ;;  %v638_v14 = vrot.slane %v551_v11, 4  ;;  %v2188_v30 = vld [vmem:[#allocation7] ss:$8 sps:$4 sm:$0xff]   ;;  %v2195_v7 = vld [vmem:[#allocation7 + $0x34] ss:$8 sps:$4 sm:$0xff]  }
 0x105   :  { %v2142_v0 = vunpack.i.h.bf16 %v2140_v59  ;;  %v2141_v1 = vunpack.i.l.bf16 %v2140_v59  ;;  %v615_v17 = vsel %vm157_vm9, %v614_v5, %v597_v60  ;;  %1509 = vmatpush1.bf16.msra.mxu0 %v2188_v30  ;;  %v2194_v26 = vld [vmem:[#allocation7 + $0x20] ss:$8 sps:$4 sm:$0xff]   ;;  %v2197_v59 = vld [vmem:[#allocation7 + $0x30] ss:$8 sps:$4 sm:$0xff]   ;;  %v2198_v60 = vld [vmem:[#allocation7 + $0x44] ss:$8 sps:$4 sm:$0xff]  }
 0x106   :  { %1510 = vmatprep.subr.bf16.mxu0 %v2189_v38  ;;  %v2200_v48 = vld [vmem:[#allocation7 + $0x40] ss:$8 sps:$4 sm:$0xff]   ;;  %v2201_v61 = vld [vmem:[#allocation7 + $0x54] ss:$8 sps:$4 sm:$0xff]   ;;  %v2203_v62 = vld [vmem:[#allocation7 + $0x50] ss:$8 sps:$4 sm:$0xff]  }
 0x107   :  { %v354_v15 = vsel %vm157_vm9, %v353_v4, %v2141_v1  ;;  %v420_v16 = vsel %vm157_vm9, %v419_v31, %v2142_v0  ;;  %v1807_v53 = vld [vmem:[%s2853_s5] ss:$0 sm:$0xff]  ;;  %v2225_v30 = vld [vmem:[#allocation7 + $0xd4] ss:$8 sps:$4 sm:$0xff]  }
 0x108   :  { %v2145_v9 = vpop.permute.xlu0 %2144  ;;  %v2150_v10 = vpop.permute.xlu1 %2149  ;;  %v2227_v38 = vld [vmem:[#allocation7 + $0xd0] ss:$8 sps:$4 sm:$0xff]  }
 0x109   :  { %v2147_v44 = vunpack.i.h.bf16 %v2145_v9  ;;  %v2146_v63 = vunpack.i.l.bf16 %v2145_v9  ;;  %v2152_v12 = vunpack.i.h.bf16 %v2150_v10  ;;  %v2151_v13 = vunpack.i.l.bf16 %v2150_v10  ;;  %1511 = vmatpush1.bf16.msra.mxu0 %v2191_v56  ;;  %v2228_v56 = vld [vmem:[#allocation7 + $0xe4] ss:$8 sps:$4 sm:$0xff]  }
 0x10a   :  { %1512 = vmatprep.subr.bf16.mxu0 %v2192_v58  ;;  %v2230_v58 = vld [vmem:[#allocation7 + $0xe0] ss:$8 sps:$4 sm:$0xff]  }
 0x10b   :  { %v160_v18 = vsel %vm159_vm10, %v158_v3, %v2146_v63  ;;  %v355_v19 = vsel %vm159_vm10, %v354_v15, %v2147_v44  ;;  %v616_v57 = vsel %vm159_vm10, %v615_v17, %v2152_v12  ;;  %v421_v20 = vsel %vm159_vm10, %v420_v16, %v2151_v13 }
 0x10c   :  { %v628_v21 = vrot.slane %v355_v19, 2  ;;  %v648_v22 = vsel %vm647_vm1, %v160_v18, %v618_v6  ;;  %v643_v23 = vrot.slane %v616_v57, 2  ;;  %v656_v25 = vsel %vm647_vm1, %v421_v20, %v633_v8 }
 0x10d   :  { %v651_v27 = vsel %vm650_vm2, %v648_v22, %v623_v24  ;;  %v658_v28 = vsel %vm650_vm2, %v656_v25, %v638_v14  ;;  %1513 = vmatpush1.bf16.msra.mxu0 %v2194_v26  ;;  %v2231_v26 = vld [vmem:[#allocation7 + $0xf4] ss:$8 sps:$4 sm:$0xff]  }
 0x10e   :  { %v654_v32 = vsel %vm653_vm3, %v651_v27, %v628_v21  ;;  %v660_v34 = vsel %vm653_vm3, %v658_v28, %v643_v23  ;;  %1514 = vmatprep.subr.bf16.mxu0 %v2195_v7  ;;  %v2178_v23 = vld [vmem:[#allocation6 + $0x80] sm:$0xff]   ;;  %v2179_v27 = vld [vmem:[#allocation6 + $0x88] sm:$0xff]   ;;  %v2180_v28 = vld [vmem:[#allocation6 + $0x90] sm:$0xff]  }
 0x10f   :  { %v662_v36 = vpack.c.bf16 %v660_v34, %v654_v32  ;;  %v2181_v32 = vld [vmem:[#allocation6 + $0x98] sm:$0xff]   ;;  %v2182_v34 = vld [vmem:[#allocation6 + $0xa0] sm:$0xff]  }
 0x110   :  { %v2233_v7 = vld [vmem:[#allocation7 + $0xf0] ss:$8 sps:$4 sm:$0xff]  }
 0x111   :  { %779 = vmatmul.mubr.bf16.vlgmr.msra.gmra.mrb[0].mxu1 %v662_v36  ;;  %1515 = vmatpush1.bf16.msra.mxu0 %v2197_v59  ;;  %v2184_v36 = vld [vmem:[#allocation6 + $0xb0] sm:$0xff]   ;;  %v2236_v59 = vld [vmem:[#allocation7 + $0x104] ss:$8 sps:$4 sm:$0xff]  }
 0x112   :  { %1927 = vmatpush3.bf16.msra.mxu1 %v2163_v35  ;;  %1516 = vmatprep.subr.bf16.mxu0 %v2198_v60  ;;  %v2183_v35 = vld [vmem:[#allocation6 + $0xa8] sm:$0xff]   ;;  %v2282_v60 = vld [vmem:[#allocation9 + $0x40] sm:$0xff]  }
 0x113   :  { %1928 = vmatprep.subr.bf16.mxu1 %v2164_v37  ;;  %v2185_v37 = vld [vmem:[#allocation6 + $0xb8] sm:$0xff]  }
 0x115   :  { %1517 = vmatpush1.bf16.msra.mxu0 %v2200_v48  ;;  %v2283_v48 = vld [vmem:[#allocation9] sm:$0xff]  }
 0x116   :  { %1929 = vmatpush3.bf16.msra.mxu1 %v2165_v39  ;;  %1518 = vmatprep.subr.bf16.mxu0 %v2201_v61  ;;  %v2284_v61 = vld [vmem:[#allocation9 + $0x48] sm:$0xff]  }
 0x117   :  { %1930 = vmatprep.subr.bf16.mxu1 %v2166_v40  ;;  %v2204_v40 = vld [vmem:[#allocation7 + $0x64] ss:$8 sps:$4 sm:$0xff]  }
 0x119   :  { %1519 = vmatpush1.bf16.msra.mxu0 %v2203_v62  ;;  %v2285_v62 = vld [vmem:[#allocation9 + $0x8] sm:$0xff]  }
 0x11a   :  { %1931 = vmatpush3.bf16.msra.mxu1 %v2167_v41  ;;  %v2206_v41 = vld [vmem:[#allocation7 + $0x60] ss:$8 sps:$4 sm:$0xff]   ;;  %1520 = vmatprep.subr.bf16.mxu0 %v2204_v40  ;;  %v2257_v40 = vld [vmem:[#allocation7 + $0x174] ss:$8 sps:$4 sm:$0xff]  }
 0x11b   :  { %1932 = vmatprep.subr.bf16.mxu1 %v2168_v42  ;;  %v2207_v42 = vld [vmem:[#allocation7 + $0x74] ss:$8 sps:$4 sm:$0xff]  }
 0x11d   :  { %1521 = vmatpush1.bf16.msra.mxu0 %v2206_v41  ;;  %v2255_v41 = vld [vmem:[#allocation7 + $0x170] ss:$8 sps:$4 sm:$0xff]  }
 0x11e   :  { %1933 = vmatpush3.bf16.msra.mxu1 %v2169_v43  ;;  %v2209_v43 = vld [vmem:[#allocation7 + $0x70] ss:$8 sps:$4 sm:$0xff]   ;;  %1522 = vmatprep.subr.bf16.mxu0 %v2207_v42  ;;  %v2260_v42 = vld [vmem:[#allocation7 + $0x184] ss:$8 sps:$4 sm:$0xff]  }
 0x11f   :  { %1934 = vmatprep.subr.bf16.mxu1 %v2170_v45  ;;  %v2210_v45 = vld [vmem:[#allocation7 + $0x84] ss:$8 sps:$4 sm:$0xff]  }
 0x121   :  { %1523 = vmatpush1.bf16.msra.mxu0 %v2209_v43  ;;  %v2258_v43 = vld [vmem:[#allocation7 + $0x180] ss:$8 sps:$4 sm:$0xff]  }
 0x122   :  { %1935 = vmatpush3.bf16.msra.mxu1 %v2171_v46  ;;  %v2212_v46 = vld [vmem:[#allocation7 + $0x80] ss:$8 sps:$4 sm:$0xff]   ;;  %1524 = vmatprep.subr.bf16.mxu0 %v2210_v45  ;;  %v2263_v45 = vld [vmem:[#allocation7 + $0x194] ss:$8 sps:$4 sm:$0xff]  }
 0x123   :  { %1936 = vmatprep.subr.bf16.mxu1 %v2172_v47  ;;  %v2213_v47 = vld [vmem:[#allocation7 + $0x94] ss:$8 sps:$4 sm:$0xff]  }
 0x125   :  { %1525 = vmatpush1.bf16.msra.mxu0 %v2212_v46  ;;  %v2261_v46 = vld [vmem:[#allocation7 + $0x190] ss:$8 sps:$4 sm:$0xff]  }
 0x126   :  { %1937 = vmatpush3.bf16.msra.mxu1 %v2173_v49  ;;  %v2215_v49 = vld [vmem:[#allocation7 + $0x90] ss:$8 sps:$4 sm:$0xff]   ;;  %1526 = vmatprep.subr.bf16.mxu0 %v2213_v47  ;;  %v2266_v47 = vld [vmem:[#allocation7 + $0x1a4] ss:$8 sps:$4 sm:$0xff]  }
 0x127   :  { %1938 = vmatprep.subr.bf16.mxu1 %v2174_v33  ;;  %v2216_v33 = vld [vmem:[#allocation7 + $0xa4] ss:$8 sps:$4 sm:$0xff]  }
 0x129   :  { %1527 = vmatpush1.bf16.msra.mxu0 %v2215_v49  ;;  %v2264_v49 = vld [vmem:[#allocation7 + $0x1a0] ss:$8 sps:$4 sm:$0xff]  }
 0x12a   :  { %1939 = vmatpush3.bf16.msra.mxu1 %v2175_v50  ;;  %v2218_v50 = vld [vmem:[#allocation7 + $0xa0] ss:$8 sps:$4 sm:$0xff]   ;;  %1528 = vmatprep.subr.bf16.mxu0 %v2216_v33  ;;  %v2269_v33 = vld [vmem:[#allocation7 + $0x1b4] ss:$8 sps:$4 sm:$0xff]  }
 0x12b   :  { %1940 = vmatprep.subr.bf16.mxu1 %v2176_v51  ;;  %v2219_v51 = vld [vmem:[#allocation7 + $0xb4] ss:$8 sps:$4 sm:$0xff]  }
 0x12d   :  { %1529 = vmatpush1.bf16.msra.mxu0 %v2218_v50  ;;  %v2267_v50 = vld [vmem:[#allocation7 + $0x1b0] ss:$8 sps:$4 sm:$0xff]  }
 0x12e   :  { %1941 = vmatpush3.bf16.msra.mxu1 %v2177_v52  ;;  %v2221_v52 = vld [vmem:[#allocation7 + $0xb0] ss:$8 sps:$4 sm:$0xff]   ;;  %1530 = vmatprep.subr.bf16.mxu0 %v2219_v51  ;;  %v2272_v51 = vld [vmem:[#allocation7 + $0x1c4] ss:$8 sps:$4 sm:$0xff]  }
 0x12f   :  { %1979 = vmatprep.subr.bf16.mxu1 %v2434_v54 }
 0x131   :  { %1531 = vmatpush1.bf16.msra.mxu0 %v2221_v52  ;;  %v2270_v52 = vld [vmem:[#allocation7 + $0x1c0] ss:$8 sps:$4 sm:$0xff]  }
 0x1e4   :  { %v780_v29 = vpop.f32.mrb[0].mxu1 }
 0x1e5   :  { %v781_v0 = vadd.f32 %v1807_v53, %v780_v29  ;;  %v782_v1 = vpop.f32.mrb[1].mxu1  ;;  %v2287_v29 = vld [vmem:[#allocation9 + $0x10] sm:$0xff]  }
 0x1e6   :  { %v783_v2 = vpop.f32.mrb[2].mxu1  ;;  %v2289_v1 = vld [vmem:[#allocation9 + $0x18] sm:$0xff]  }
 0x1e7   :  { %v787_v3 = vmul.f32 0.2, %v781_v0  ;;  %v784_v4 = vadd.f32 %v1807_v53, %v783_v2  ;;  %v785_v11 = vpop.f32.mrb[3].mxu1  ;;  %v2286_v53 = vld [vmem:[#allocation9 + $0x50] sm:$0xff]   ;;  %v2290_v2 = vld [vmem:[#allocation9 + $0x60] sm:$0xff]  }
 0x1e9   :  { %v789_v5 = vmax.f32 %v781_v0, %v787_v3  ;;  %v788_v6 = vmul.f32 0.2, %v784_v4  ;;  %v2288_v0 = vld [vmem:[#allocation9 + $0x58] sm:$0xff]   ;;  %v2291_v3 = vld [vmem:[#allocation9 + $0x20] sm:$0xff]  }
 0x1eb   :  { %v792_v8 = vrot.slane %v789_v5, 2  ;;  %v808_v31 = vsel %vm647_vm1, 0.0, %v789_v5  ;;  %v790_v24 = vmax.f32 %v784_v4, %v788_v6  ;;  %v794_v9 = vrot.slane %v789_v5, 4  ;;  %v2292_v4 = vld [vmem:[#allocation9 + $0x68] sm:$0xff]  }
 0x1ed   :  { %v797_v10 = vrot.slane %v790_v24, 2  ;;  %v798_v44 = vrot.slane %v790_v24, 4  ;;  %v811_v63 = vsel %vm650_vm2, %v808_v31, %v792_v8  ;;  %v809_v16 = vsel %vm647_vm1, %v789_v5, %v792_v8  ;;  %v1818_v24 = vld [vmem:[%s2853_s5 + $0x1] ss:$0 sm:$0xff] }
 0x1ee   :  { %v810_v18 = vsel %vm647_vm1, %v792_v8, %v794_v9 }
 0x1ef   :  { %v799_v12 = vrot.slane %v797_v10, 2  ;;  %v800_v13 = vrot.slane %v798_v44, 2  ;;  %v803_v14 = vrot.slane %v797_v10, 4  ;;  %v804_v15 = vrot.slane %v798_v44, 4 }
 0x1f0   :  { %v814_v17 = vsel %vm653_vm3, %v811_v63, %v798_v44 }
 0x1f1   :  { %v812_v19 = vsel %vm650_vm2, %v809_v16, %v799_v12  ;;  %v813_v57 = vsel %vm650_vm2, %v810_v18, %v800_v13  ;;  %v817_v25 = vpack.c.bf16 %v814_v17, %v814_v17 }
 0x1f2   :  { %v815_v20 = vsel %vm653_vm3, %v812_v19, %v803_v14  ;;  %v816_v21 = vsel %vm653_vm3, %v813_v57, %v804_v15  ;;  %v2234_v19 = vld [vmem:[#allocation7 + $0x100] ss:$8 sps:$4 sm:$0xff]  }
 0x1f3   :  { %v818_v22 = vpack.c.bf16 %v815_v20, %v815_v20  ;;  %v819_v39 = vpack.c.bf16 %v816_v21, %v816_v21  ;;  %v2239_v20 = vld [vmem:[#allocation7 + $0x114] ss:$8 sps:$4 sm:$0xff]  }
 0x1f5   :  { %1051 = vmatprep.mubr.bf16.mxu1 %v818_v22  ;;  %v2237_v22 = vld [vmem:[#allocation7 + $0x110] ss:$8 sps:$4 sm:$0xff]  }
 0x1f6   :  { %1052 = vmatmul.mubr.bf16.vlgmr.msra.gmra.mrb[4].mxu1 %v817_v25  ;;  %v2240_v25 = vld [vmem:[#allocation7 + $0x120] ss:$8 sps:$4 sm:$0xff]  }
 0x1f7   :  { %1980 = vmatpush3.bf16.msra.mxu1 %v2178_v23  ;;  %1995 = vmatprep.mubr.msk.bf16.mxu1 %vm2435_vm11, %v2434_v54  ;;  %v2242_v23 = vld [vmem:[#allocation7 + $0x124] ss:$8 sps:$4 sm:$0xff]  }
 0x1f8   :  { %1981 = vmatprep.subr.bf16.mxu1 %v2434_v54 }
 0x1fb   :  { %1982 = vmatpush3.bf16.msra.mxu1 %v2179_v27  ;;  %v2245_v27 = vld [vmem:[#allocation7 + $0x134] ss:$8 sps:$4 sm:$0xff]  }
 0x1fc   :  { %1983 = vmatprep.subr.bf16.mxu1 %v2434_v54 }
 0x1ff   :  { %1984 = vmatpush3.bf16.msra.mxu1 %v2180_v28  ;;  %v2243_v28 = vld [vmem:[#allocation7 + $0x130] ss:$8 sps:$4 sm:$0xff]  }
 0x200   :  { %1985 = vmatprep.subr.bf16.mxu1 %v2434_v54 }
 0x203   :  { %1986 = vmatpush3.bf16.msra.mxu1 %v2181_v32  ;;  %v2248_v32 = vld [vmem:[#allocation7 + $0x144] ss:$8 sps:$4 sm:$0xff]  }
 0x204   :  { %1987 = vmatprep.subr.bf16.mxu1 %v2434_v54 }
 0x207   :  { %1988 = vmatpush3.bf16.msra.mxu1 %v2182_v34  ;;  %v2246_v34 = vld [vmem:[#allocation7 + $0x140] ss:$8 sps:$4 sm:$0xff]  }
 0x208   :  { %1989 = vmatprep.subr.bf16.mxu1 %v2434_v54 }
 0x20b   :  { %1990 = vmatpush3.bf16.msra.mxu1 %v2183_v35  ;;  %v2251_v35 = vld [vmem:[#allocation7 + $0x154] ss:$8 sps:$4 sm:$0xff]  }
 0x20c   :  { %1991 = vmatprep.subr.bf16.mxu1 %v2434_v54 }
 0x20f   :  { %1992 = vmatpush3.bf16.msra.mxu1 %v2184_v36  ;;  %v2249_v36 = vld [vmem:[#allocation7 + $0x150] ss:$8 sps:$4 sm:$0xff]  }
 0x210   :  { %1993 = vmatprep.subr.bf16.mxu1 %v2434_v54  ;;  %v2222_v54 = vld [vmem:[#allocation7 + $0xc4] ss:$8 sps:$4 sm:$0xff]  }
 0x211   :  { %1532 = vmatprep.subr.bf16.mxu0 %v2222_v54  ;;  %v2275_v54 = vld [vmem:[#allocation7 + $0x1d4] ss:$8 sps:$4 sm:$0xff]  }
 0x212   :  { %1533 = vmatpush1.bf16.msra.mxu0 %v2224_v55  ;;  %v2273_v55 = vld [vmem:[#allocation7 + $0x1d0] ss:$8 sps:$4 sm:$0xff]  }
 0x213   :  { %1994 = vmatpush3.bf16.msra.mxu1 %v2185_v37  ;;  %1534 = vmatprep.subr.bf16.mxu0 %v2225_v30  ;;  %v2254_v37 = vld [vmem:[#allocation7 + $0x164] ss:$8 sps:$4 sm:$0xff]  }
 0x214   :  { %1957 = vmatprep.subr.bf16.mxu1 %v2282_v60  ;;  %v2278_v30 = vld [vmem:[#allocation7 + $0x1e4] ss:$8 sps:$4 sm:$0xff]   ;;  %v2294_v60 = vld [vmem:[#allocation9 + $0x70] sm:$0xff]  }
 0x216   :  { %1996 = vmatmul.mubr.bf16.vlgmr.msra.gmra.mrb[8].mxu1 %v819_v39  ;;  %1535 = vmatpush1.bf16.msra.mxu0 %v2227_v38  ;;  %v2252_v39 = vld [vmem:[#allocation7 + $0x160] ss:$8 sps:$4 sm:$0xff]  }
 0x217   :  { %1536 = vmatprep.subr.bf16.mxu0 %v2228_v56  ;;  %1958 = vmatpush3.bf16.msra.mxu1 %v2283_v48  ;;  %v2276_v38 = vld [vmem:[#allocation7 + $0x1e0] ss:$8 sps:$4 sm:$0xff]   ;;  %v2281_v56 = vld [vmem:[#allocation7 + $0x1f4] ss:$8 sps:$4 sm:$0xff]  }
 0x218   :  { %1959 = vmatprep.subr.bf16.mxu1 %v2284_v61  ;;  %v2295_v48 = vld [vmem:[#allocation9 + $0x30] sm:$0xff]   ;;  %v2296_v61 = vld [vmem:[#allocation9 + $0x78] sm:$0xff]  }
 0x21a   :  { %1537 = vmatpush1.bf16.msra.mxu0 %v2230_v58  ;;  %v2279_v58 = vld [vmem:[#allocation7 + $0x1f0] ss:$8 sps:$4 sm:$0xff]  }
 0x21b   :  { %1538 = vmatprep.subr.bf16.mxu0 %v2231_v26  ;;  %1960 = vmatpush3.bf16.msra.mxu1 %v2285_v62  ;;  %v2297_v62 = vld [vmem:[#allocation9 + $0x38] sm:$0xff]  }
 0x21c   :  { %1961 = vmatprep.subr.bf16.mxu1 %v2286_v53  ;;  %v1178_v53 = vlaneseq }
 0x21e   :  { %1539 = vmatpush1.bf16.msra.mxu0 %v2233_v7 }
 0x21f   :  { %1549 = vmatprep.subr.bf16.mxu0 %v2236_v59  ;;  %1962 = vmatpush3.bf16.msra.mxu1 %v2287_v29  ;;  %v2293_v59 = vld [vmem:[#allocation9 + $0x28] sm:$0xff]   ;;  %v1179_v29 = vshrl.u32 %v1178_v53, 7 }
 0x220   :  { %1963 = vmatprep.subr.bf16.mxu1 %v2288_v0 }
 0x221   :  { %v1180_v0 = vsub.s32 0, %v1179_v29 }
 0x223   :  { %1964 = vmatpush3.bf16.msra.mxu1 %v2289_v1  ;;  %v1176_v1 = vld [vmem:[%s2853_s5 + $0x2] sm:$0x3] }
 0x224   :  { %1965 = vmatprep.subr.bf16.mxu1 %v2290_v2  ;;  %v1184_v2 = vsub.s32 1, %v1179_v29 }
 0x227   :  { %1966 = vmatpush3.bf16.msra.mxu1 %v2291_v3  ;;  %v1181_v3 = vrot.slane %v1176_v1, %v1180_v0 }
 0x228   :  { %1967 = vmatprep.subr.bf16.mxu1 %v2292_v4  ;;  %v1185_v4 = vrot.slane %v1176_v1, %v1184_v2 }
 0x22b   :  { %1968 = vmatpush3.bf16.msra.mxu1 %v2293_v59 }
 0x22c   :  { %1969 = vmatprep.subr.bf16.mxu1 %v2294_v60 }
 0x22f   :  { %1970 = vmatpush3.bf16.msra.mxu1 %v2295_v48 }
 0x230   :  { %1971 = vmatprep.subr.bf16.mxu1 %v2296_v61 }
 0x233   :  { %1972 = vmatpush3.bf16.msra.mxu1 %v2297_v62 }
 0x2c9   :  { %v1942_v11 = vpop.f32.mrb[4].mxu1 }
 0x2ca   :  { %v1943_v5 = vpop.f32.mrb[5].mxu1 }
 0x2cb   :  { %v1944_v6 = vadd.f32 %v1943_v5, %v1942_v11  ;;  %v1945_v8 = vpop.f32.mrb[6].mxu1 }
 0x2cc   :  { %v1946_v31 = vpop.f32.mrb[7].mxu1 }
 0x2cd   :  { %v1054_v9 = vadd.f32 %v1944_v6, %v1818_v24 }
 0x2e9   :  { %v1093_v10 = vpop.f32.mrb[8].mxu1 }
 0x2ea   :  { %v1094_v44 = vadd.f32 %v1093_v10, %v1054_v9  ;;  %v1997_v63 = vpop.f32.mrb[9].mxu1 }
 0x2eb   :  { %v1096_v12 = vpop.f32.mrb[10].mxu1 }
 0x2ec   :  { %v1099_v13 = vmul.f32 0.2, %v1094_v44  ;;  %v1998_v14 = vpop.f32.mrb[11].mxu1 }
 0x2ee   :  { %v2825_v15 = vmax.f32 %v1094_v44, %v1099_v13 }
 0x2f0   :  { %v1102_v16 = vrot.slane %v2825_v15, 2  ;;  %v1106_v17 = vrot.slane %v2825_v15, 6  ;;  %v1108_v57 = vpack.c.bf16 %v2825_v15, %v2825_v15  ;;  %v1104_v26 = vrot.slane %v2825_v15, 4  ;;  %v1907_v15 = vld [vmem:[%s2853_s5 + $0x4] ss:$0 sm:$0xff] }
 0x2f2   :  { %v1109_v18 = vpack.c.bf16 %v1102_v16, %v1102_v16  ;;  %v1111_v21 = vpack.c.bf16 %v1106_v17, %v1106_v17  ;;  %v1110_v7 = vpack.c.bf16 %v1104_v26, %v1104_v26 }
 0x2f4   :  { %1540 = vmatprep.mubr.bf16.mxu0 %v1109_v18 }
 0x2f5   :  { %1541 = vmatmul.mubr.bf16.vlgmr.msra.gmra.mrb[0].mxu0 %v1108_v57 }
 0x2f6   :  { %1550 = vmatpush1.bf16.msra.mxu0 %v2234_v19  ;;  %1581 = vmatprep.mubr.bf16.mxu0 %v1111_v21  ;;  %v1924_v21 = vld [vmem:[%s2853_s5 + $0x5] ss:$0 sm:$0xff] }
 0x2f7   :  { %1551 = vmatprep.subr.bf16.mxu0 %v2239_v20 }
 0x2fa   :  { %1552 = vmatpush1.bf16.msra.mxu0 %v2237_v22 }
 0x2fb   :  { %1553 = vmatprep.subr.bf16.mxu0 %v2242_v23 }
 0x2fe   :  { %1554 = vmatpush1.bf16.msra.mxu0 %v2240_v25 }
 0x2ff   :  { %1555 = vmatprep.subr.bf16.mxu0 %v2245_v27  ;;  %v1925_v27 = vld [vmem:[%s2853_s5 + $0x6] ss:$0 sm:$0xff] }
 0x302   :  { %1556 = vmatpush1.bf16.msra.mxu0 %v2243_v28 }
 0x303   :  { %1557 = vmatprep.subr.bf16.mxu0 %v2248_v32 }
 0x306   :  { %1558 = vmatpush1.bf16.msra.mxu0 %v2246_v34 }
 0x307   :  { %1559 = vmatprep.subr.bf16.mxu0 %v2251_v35 }
 0x30a   :  { %1560 = vmatpush1.bf16.msra.mxu0 %v2249_v36 }
 0x30b   :  { %1561 = vmatprep.subr.bf16.mxu0 %v2254_v37 }
 0x30e   :  { %1562 = vmatpush1.bf16.msra.mxu0 %v2252_v39 }
 0x30f   :  { %1563 = vmatprep.subr.bf16.mxu0 %v2257_v40 }
 0x312   :  { %1564 = vmatpush1.bf16.msra.mxu0 %v2255_v41 }
 0x313   :  { %1565 = vmatprep.subr.bf16.mxu0 %v2260_v42 }
 0x316   :  { %1566 = vmatpush1.bf16.msra.mxu0 %v2258_v43 }
 0x317   :  { %1567 = vmatprep.subr.bf16.mxu0 %v2263_v45 }
 0x31a   :  { %1568 = vmatpush1.bf16.msra.mxu0 %v2261_v46 }
 0x31b   :  { %1569 = vmatprep.subr.bf16.mxu0 %v2266_v47 }
 0x31e   :  { %1570 = vmatpush1.bf16.msra.mxu0 %v2264_v49 }
 0x31f   :  { %1571 = vmatprep.subr.bf16.mxu0 %v2269_v33 }
 0x322   :  { %1572 = vmatpush1.bf16.msra.mxu0 %v2267_v50 }
 0x323   :  { %1573 = vmatprep.subr.bf16.mxu0 %v2272_v51 }
 0x326   :  { %1574 = vmatpush1.bf16.msra.mxu0 %v2270_v52 }
 0x327   :  { %1575 = vmatprep.subr.bf16.mxu0 %v2275_v54 }
 0x32a   :  { %1576 = vmatpush1.bf16.msra.mxu0 %v2273_v55 }
 0x32b   :  { %1577 = vmatprep.subr.bf16.mxu0 %v2278_v30 }
 0x32e   :  { %1578 = vmatpush1.bf16.msra.mxu0 %v2276_v38 }
 0x32f   :  { %1579 = vmatprep.subr.bf16.mxu0 %v2281_v56 }
 0x332   :  { %1580 = vmatpush1.bf16.msra.mxu0 %v2279_v58 }
 0x335   :  { %1582 = vmatmul.mubr.bf16.vlgmr.msra.gmra.mrb[0].mxu0 %v1110_v7 }
 0x408   :  { %v1583_v11 = vpop.f32.mrb[0].mxu0 }
 0x409   :  { %v1999_v5 = vadd.f32 %v1583_v11, %v1181_v3  ;;  %v1585_v6 = vpop.f32.mrb[1].mxu0 }
 0x40a   :  { %v2000_v8 = vadd.f32 %v1585_v6, %v1185_v4  ;;  %v1587_v31 = vpop.f32.mrb[2].mxu0 }
 0x40b   :  { %v1590_v24 = vmul.f32 0.2, %v1999_v5  ;;  %v1588_v9 = vpop.f32.mrb[3].mxu0 }
 0x40c   :  { %v1591_v10 = vmul.f32 0.2, %v2000_v8 }
 0x40d   :  { %v1592_v44 = vmax.f32 %v1999_v5, %v1590_v24 }
 0x40e   :  { %v1593_v63 = vmax.f32 %v2000_v8, %v1591_v10 }
 0x40f   :  { %v1594_v13 = vpack.c.bf16 %v1592_v44, %v1592_v44 }
 0x410   :  { %v1595_v12 = vpack.c.bf16 %v1593_v63, %v1593_v63 }
 0x412   :  { %1763 = vmatprep.mubr.bf16.mxu1 %v1595_v12 }
 0x413   :  { %1764 = vmatmul.mubr.bf16.vlgmr.msra.gmra.mrb[12].mxu1 %v1594_v13 }
 0x4e6   :  { %v1973_v14 = vpop.f32.mrb[12].mxu1 }
 0x4e7   :  { %v1974_v16 = vpop.f32.mrb[13].mxu1 }
 0x4e8   :  { %v1975_v17 = vadd.f32 %v1974_v16, %v1973_v14  ;;  %v1976_v18 = vpop.f32.mrb[14].mxu1 }
 0x4e9   :  { %v1977_v19 = vpop.f32.mrb[15].mxu1 }
 0x4ea   :  { %v1766_v57 = vadd.f32 %v1975_v17, %v1907_v15 }
 0x4ec   :  { %v1771_v20 = vmul.f32 0.2, %v1766_v57 }
 0x4ee   :  { %v1772_v22 = vmax.f32 %v1766_v57, %v1771_v20 }
 0x4f0   :  { %v1780_v23 = vmul.f32 %v1924_v21, %v1772_v22 }
 0x4f2   :  { %v1781_v25 = vsel %vm647_vm1, %v1780_v23, 0.0 }
 0x4f3   :  { %1782 = vadd.xlane.f32.xlu0 %v1781_v25 }
 0x580   :  { %v1783_v28 = vpop.xlane.xlu0 %1782 }
 0x581   :  { %v1791_v32 = vadd.f32 %v1925_v27, %v1783_v28 }
 0x583   :  { %v1792_v34 = vsub.f32 0.0, %v1791_v32 }
 0x585   :  { %v1793_v35 = vmul.f32 1.442695, %v1792_v34 }
 0x587   :  { %2298 = vpow2.f32 %v1793_v35 }
 0x591   :  { %v2299_v36 = vpop.eup %2298 }
 0x592   :  { %v1795_v37 = vadd.f32 1.0, %v2299_v36 }
 0x594   :  { %2300 = vrcp.f32 %v1795_v37 }
 0x59e   :  { %v2301_v39 = vpop.eup %2300 }
 0x59f   :  { %1799 = vst.msk [vmem:[%s2854_s6] sm:$0x3] %vm1798_vm12, %v2301_v39 }
 0x5a0   :  { %1804 = vsyncpa [#allocation3], 1 }
 0x5a1   :  { %1805 = vsyncpa [#allocation5], 1 }
 0x5a2   :  { %1806 = vsyncpa [#allocation8], 1 }

</bundles_post_ra>
